<compile_context>
chip_gen: v7x
topology: tpu7x:2x2x1
jax: 0.10.0
libtpu: 0.0.40
codegen_flags: <defaults>
</compile_context>

<pallas_src>
import jax
import jax.numpy as jnp
from jax.experimental import pallas as pl
from jax.experimental.pallas import tpu as pltpu


LANE_CHUNK = 4096               # in-kernel sub-slab width (multiple of 128)
MAX_TL = 32768                  # max length tile per grid step (multiple of LANE_CHUNK)
SMALL_COLLAPSE_BYTES = 256 * 1024   # below this, run the whole array in one grid step


def bb2_kernel(x_ref, w_ref, b_ref, o_ref):
    # x_ref: (bn, C, tl) input tile  (channels on sublanes, length on lanes)
    # w_ref: (4, C, C) stacked [W1, 2*W2, 2*W3, We]   (out_ch, in_ch)
    # b_ref: (4, C, 1) stacked biases (broadcast over lanes)
    bn, C, tl = x_ref.shape
    use_mxu = C > 16                      # tiny C: VPU broadcast-accumulate; big C: MXU

    w = w_ref[...].astype(jnp.float32)    # tiny, resident
    b = b_ref[...].astype(jnp.float32)
    w_bf = w.astype(jnp.bfloat16) if use_mxu else None

    def conv_chain(x):                    # x: (C, width) f32
        x2 = x + x                        # in-place `x += x` of the first BasicBlock_1
        h = x2
        for ci in range(4):
            src = h if ci < 3 else h + x2     # BasicBlock_2 residual into the last conv
            if use_mxu:
                # Explicit bf16 operands -> guaranteed single vmatmul pass.
                acc = jnp.dot(w_bf[ci], src.astype(jnp.bfloat16),
                              preferred_element_type=jnp.float32) + b[ci]
            else:
                # VPU path: out[o, :] = b[o] + sum_k W[o, k] * src[k, :]
                acc = jnp.broadcast_to(b[ci], src.shape)
                for k in range(C):
                    wk = jnp.broadcast_to(w[ci, :, k:k + 1], src.shape)  # lane-bcast col k
                    sk = jnp.broadcast_to(src[k:k + 1, :], src.shape)    # sublane-bcast row k
                    acc = acc + wk * sk
            h = jnp.maximum(acc, 0.0)
        return h

    # Static sub-slab schedule over the length axis: keeps every intermediate at
    # (C, <=LANE_CHUNK) so the chain lives in vregs / small VMEM, not full-tile temps.
    for i in range(bn):
        off = 0
        while off < tl:
            width = min(LANE_CHUNK, tl - off)
            x = x_ref[i, :, pl.ds(off, width)].astype(jnp.float32)
            y = conv_chain(x)
            o_ref[i, :, pl.ds(off, width)] = y.astype(o_ref.dtype)
            off += width


def basic_block_2(x_ncl, params):
    """x_ncl: (N, C, L). params: W1..W3, We (C_out, C_in) and b1..b3, be (C,)."""
    N, C, L = x_ncl.shape

    # Stack weights once; fold the constant 2x scalings of y1/y2 into W2/W3.
    W = jnp.stack(
        [params["W1"], 2.0 * params["W2"], 2.0 * params["W3"], params["We"]],
        axis=0).astype(jnp.float32)                      # (4, C, C)
    b = jnp.stack(
        [params["b1"], params["b2"], params["b3"], params["be"]],
        axis=0).astype(jnp.float32).reshape(4, C, 1)     # (4, C, 1)

    total_bytes = N * C * L * x_ncl.dtype.itemsize
    if total_bytes <= SMALL_COLLAPSE_BYTES and N <= 4:
        # Tiny problem: one grid step over the whole array (per-step overhead floor).
        bn, tl = N, L
    else:
        bn = 1
        if L <= LANE_CHUNK:
            tl = L                                        # full-dim block, always legal
        else:
            tl = min(MAX_TL, LANE_CHUNK * pl.cdiv(L, LANE_CHUNK))
            if N == 1:
                # v7x: guarantee >=2 length blocks so both TensorCores get work.
                tl = min(tl, LANE_CHUNK * pl.cdiv(pl.cdiv(L, 2), LANE_CHUNK))
            tl = max(tl, LANE_CHUNK)

    grid = (pl.cdiv(N, bn), pl.cdiv(L, tl))

    return pl.pallas_call(
        bb2_kernel,
        out_shape=jax.ShapeDtypeStruct((N, C, L), x_ncl.dtype),
        grid_spec=pltpu.PrefetchScalarGridSpec(
            num_scalar_prefetch=0,
            grid=grid,
            in_specs=[
                pl.BlockSpec((bn, C, tl), lambda n, l: (n, 0, l)),   # x tile (NCL)
                pl.BlockSpec((4, C, C), lambda n, l: (0, 0, 0)),     # resident weights
                pl.BlockSpec((4, C, 1), lambda n, l: (0, 0, 0)),     # resident biases
            ],
            out_specs=pl.BlockSpec((bn, C, tl), lambda n, l: (n, 0, l)),
        ),
        compiler_params=pltpu.CompilerParams(
            dimension_semantics=("parallel", "parallel"),
            vmem_limit_bytes=32 * 1024 * 1024),
    )(x_ncl, W, b)


def ref_forward(x_ncl, params):
    """Pure-JAX reference of the (aliasing-aware) PyTorch forward, exact f32."""
    def conv1x1(inp, Wm, bv):
        # out[n,o,l] = sum_c Wm[o,c] * inp[n,c,l] + bv[o]   (exact f32, no MXU)
        return (Wm[None, :, :, None] * inp[:, None, :, :]).sum(axis=2) + bv[None, :, None]
    x2 = 2.0 * x_ncl
    y1 = jax.nn.relu(conv1x1(x2, params["W1"], params["b1"]))
    y2 = jax.nn.relu(conv1x1(2.0 * y1, params["W2"], params["b2"]))
    y3 = jax.nn.relu(conv1x1(2.0 * y2, params["W3"], params["b3"]))
    return jax.nn.relu(conv1x1(y3 + x2, params["We"], params["be"]))


if __name__ == "__main__":
    N, C, L = 2, 8, 128
    key = jax.random.PRNGKey(0)
    kx, k1, k2, k3, k4, k5, k6, k7, k8 = jax.random.split(key, 9)

    x = jax.random.normal(kx, (N, C, L), dtype=jnp.float32)
    scale = 1.0 / jnp.sqrt(C)
    params = {
        "W1": jax.random.normal(k1, (C, C), jnp.float32) * scale,
        "b1": jax.random.normal(k2, (C,), jnp.float32) * 0.1,
        "W2": jax.random.normal(k3, (C, C), jnp.float32) * scale,
        "b2": jax.random.normal(k4, (C,), jnp.float32) * 0.1,
        "W3": jax.random.normal(k5, (C, C), jnp.float32) * scale,
        "b3": jax.random.normal(k6, (C,), jnp.float32) * 0.1,
        "We": jax.random.normal(k7, (C, C), jnp.float32) * scale,
        "be": jax.random.normal(k8, (C,), jnp.float32) * 0.1,
    }
    # NOTE: the Conv1d(3,1,1)+Tanh / +Sigmoid / end layers of BasicBlock_0 are
    # output-dead (BasicBlock_0 returns its input), so no parameters exist for them.

    out = jax.block_until_ready(basic_block_2(x, params))
    ref = ref_forward(x, params)
    assert out.shape == (N, C, L)
    assert jnp.allclose(out, ref, atol=1e-4, rtol=1e-4), "mismatch vs JAX reference"
    print("KERNEL_OK")
</pallas_src>

<mosaic_0001>
module attributes {stable_mosaic.version = 11 : i64} {
  func.func @bb2_kernel(%arg0: i32, %arg1: i32, %arg2: memref<2x8x128xf32, #tpu.memory_space<vmem>>, %arg3: memref<4x8x8xf32, #tpu.memory_space<vmem>>, %arg4: memref<4x8x1xf32, #tpu.memory_space<vmem>>, %arg5: memref<2x8x128xf32, #tpu.memory_space<vmem>>) attributes {dimension_semantics = [#tpu.dimension_semantics<parallel>, #tpu.dimension_semantics<parallel>], iteration_bounds = array<i64: 1, 1>, scalar_prefetch = 0 : i64, scratch_operands = 0 : i64, tpu.core_type = #tpu.core_type<tc>, window_params = [{transform_indices = @transform_0, window_bounds = array<i64: 2, 8, 128>}, {pipeline_mode = #tpu.pipeline_mode<synchronous>, transform_indices = @transform_1, window_bounds = array<i64: 4, 8, 8>}, {pipeline_mode = #tpu.pipeline_mode<synchronous>, transform_indices = @transform_2, window_bounds = array<i64: 4, 8, 1>}, {transform_indices = @transform_3, window_bounds = array<i64: 2, 8, 128>}]} {
    %c0 = arith.constant 0 : index
    %c0_0 = arith.constant 0 : index
    %c0_1 = arith.constant 0 : index
    %0 = vector.load %arg3[%c0, %c0_0, %c0_1] : memref<4x8x8xf32, #tpu.memory_space<vmem>>, vector<4x8x8xf32>
    %c0_2 = arith.constant 0 : index
    %c0_3 = arith.constant 0 : index
    %c0_4 = arith.constant 0 : index
    %1 = vector.load %arg4[%c0_2, %c0_3, %c0_4] : memref<4x8x1xf32, #tpu.memory_space<vmem>>, vector<4x8x1xf32>
    %c0_5 = arith.constant 0 : index
    %c0_6 = arith.constant 0 : index
    %c0_7 = arith.constant 0 : index
    %2 = vector.load %arg2[%c0_5, %c0_6, %c0_7] : memref<2x8x128xf32, #tpu.memory_space<vmem>>, vector<1x8x128xf32>
    %3 = vector.shape_cast %2 : vector<1x8x128xf32> to vector<8x128xf32>
    %4 = arith.addf %3, %3 : vector<8x128xf32>
    %5 = vector.extract_strided_slice %1 {offsets = [0, 0, 0], sizes = [1, 8, 1], strides = [1, 1, 1]} : vector<4x8x1xf32> to vector<1x8x1xf32>
    %6 = vector.shape_cast %5 : vector<1x8x1xf32> to vector<8x1xf32>
    %7 = vector.shape_cast %6 : vector<8x1xf32> to vector<8x1xf32>
    %8 = vector.broadcast %7 : vector<8x1xf32> to vector<8x128xf32>
    %9 = vector.extract_strided_slice %0 {offsets = [0, 0, 0], sizes = [1, 8, 1], strides = [1, 1, 1]} : vector<4x8x8xf32> to vector<1x8x1xf32>
    %10 = vector.shape_cast %9 : vector<1x8x1xf32> to vector<8x1xf32>
    %11 = vector.shape_cast %10 : vector<8x1xf32> to vector<8x1xf32>
    %12 = vector.broadcast %11 : vector<8x1xf32> to vector<8x128xf32>
    %13 = vector.extract_strided_slice %4 {offsets = [0, 0], sizes = [1, 128], strides = [1, 1]} : vector<8x128xf32> to vector<1x128xf32>
    %14 = vector.shape_cast %13 : vector<1x128xf32> to vector<1x128xf32>
    %15 = vector.broadcast %14 : vector<1x128xf32> to vector<8x128xf32>
    %16 = arith.mulf %12, %15 : vector<8x128xf32>
    %17 = arith.addf %8, %16 : vector<8x128xf32>
    %18 = vector.extract_strided_slice %0 {offsets = [0, 0, 1], sizes = [1, 8, 1], strides = [1, 1, 1]} : vector<4x8x8xf32> to vector<1x8x1xf32>
    %19 = vector.shape_cast %18 : vector<1x8x1xf32> to vector<8x1xf32>
    %20 = vector.shape_cast %19 : vector<8x1xf32> to vector<8x1xf32>
    %21 = vector.broadcast %20 : vector<8x1xf32> to vector<8x128xf32>
    %22 = vector.extract_strided_slice %4 {offsets = [1, 0], sizes = [1, 128], strides = [1, 1]} : vector<8x128xf32> to vector<1x128xf32>
    %23 = vector.shape_cast %22 : vector<1x128xf32> to vector<1x128xf32>
    %24 = vector.broadcast %23 : vector<1x128xf32> to vector<8x128xf32>
    %25 = arith.mulf %21, %24 : vector<8x128xf32>
    %26 = arith.addf %17, %25 : vector<8x128xf32>
    %27 = vector.extract_strided_slice %0 {offsets = [0, 0, 2], sizes = [1, 8, 1], strides = [1, 1, 1]} : vector<4x8x8xf32> to vector<1x8x1xf32>
    %28 = vector.shape_cast %27 : vector<1x8x1xf32> to vector<8x1xf32>
    %29 = vector.shape_cast %28 : vector<8x1xf32> to vector<8x1xf32>
    %30 = vector.broadcast %29 : vector<8x1xf32> to vector<8x128xf32>
    %31 = vector.extract_strided_slice %4 {offsets = [2, 0], sizes = [1, 128], strides = [1, 1]} : vector<8x128xf32> to vector<1x128xf32>
    %32 = vector.shape_cast %31 : vector<1x128xf32> to vector<1x128xf32>
    %33 = vector.broadcast %32 : vector<1x128xf32> to vector<8x128xf32>
    %34 = arith.mulf %30, %33 : vector<8x128xf32>
    %35 = arith.addf %26, %34 : vector<8x128xf32>
    %36 = vector.extract_strided_slice %0 {offsets = [0, 0, 3], sizes = [1, 8, 1], strides = [1, 1, 1]} : vector<4x8x8xf32> to vector<1x8x1xf32>
    %37 = vector.shape_cast %36 : vector<1x8x1xf32> to vector<8x1xf32>
    %38 = vector.shape_cast %37 : vector<8x1xf32> to vector<8x1xf32>
    %39 = vector.broadcast %38 : vector<8x1xf32> to vector<8x128xf32>
    %40 = vector.extract_strided_slice %4 {offsets = [3, 0], sizes = [1, 128], strides = [1, 1]} : vector<8x128xf32> to vector<1x128xf32>
    %41 = vector.shape_cast %40 : vector<1x128xf32> to vector<1x128xf32>
    %42 = vector.broadcast %41 : vector<1x128xf32> to vector<8x128xf32>
    %43 = arith.mulf %39, %42 : vector<8x128xf32>
    %44 = arith.addf %35, %43 : vector<8x128xf32>
    %45 = vector.extract_strided_slice %0 {offsets = [0, 0, 4], sizes = [1, 8, 1], strides = [1, 1, 1]} : vector<4x8x8xf32> to vector<1x8x1xf32>
    %46 = vector.shape_cast %45 : vector<1x8x1xf32> to vector<8x1xf32>
    %47 = vector.shape_cast %46 : vector<8x1xf32> to vector<8x1xf32>
    %48 = vector.broadcast %47 : vector<8x1xf32> to vector<8x128xf32>
    %49 = vector.extract_strided_slice %4 {offsets = [4, 0], sizes = [1, 128], strides = [1, 1]} : vector<8x128xf32> to vector<1x128xf32>
    %50 = vector.shape_cast %49 : vector<1x128xf32> to vector<1x128xf32>
    %51 = vector.broadcast %50 : vector<1x128xf32> to vector<8x128xf32>
    %52 = arith.mulf %48, %51 : vector<8x128xf32>
    %53 = arith.addf %44, %52 : vector<8x128xf32>
    %54 = vector.extract_strided_slice %0 {offsets = [0, 0, 5], sizes = [1, 8, 1], strides = [1, 1, 1]} : vector<4x8x8xf32> to vector<1x8x1xf32>
    %55 = vector.shape_cast %54 : vector<1x8x1xf32> to vector<8x1xf32>
    %56 = vector.shape_cast %55 : vector<8x1xf32> to vector<8x1xf32>
    %57 = vector.broadcast %56 : vector<8x1xf32> to vector<8x128xf32>
    %58 = vector.extract_strided_slice %4 {offsets = [5, 0], sizes = [1, 128], strides = [1, 1]} : vector<8x128xf32> to vector<1x128xf32>
    %59 = vector.shape_cast %58 : vector<1x128xf32> to vector<1x128xf32>
    %60 = vector.broadcast %59 : vector<1x128xf32> to vector<8x128xf32>
    %61 = arith.mulf %57, %60 : vector<8x128xf32>
    %62 = arith.addf %53, %61 : vector<8x128xf32>
    %63 = vector.extract_strided_slice %0 {offsets = [0, 0, 6], sizes = [1, 8, 1], strides = [1, 1, 1]} : vector<4x8x8xf32> to vector<1x8x1xf32>
    %64 = vector.shape_cast %63 : vector<1x8x1xf32> to vector<8x1xf32>
    %65 = vector.shape_cast %64 : vector<8x1xf32> to vector<8x1xf32>
    %66 = vector.broadcast %65 : vector<8x1xf32> to vector<8x128xf32>
    %67 = vector.extract_strided_slice %4 {offsets = [6, 0], sizes = [1, 128], strides = [1, 1]} : vector<8x128xf32> to vector<1x128xf32>
    %68 = vector.shape_cast %67 : vector<1x128xf32> to vector<1x128xf32>
    %69 = vector.broadcast %68 : vector<1x128xf32> to vector<8x128xf32>
    %70 = arith.mulf %66, %69 : vector<8x128xf32>
    %71 = arith.addf %62, %70 : vector<8x128xf32>
    %72 = vector.extract_strided_slice %0 {offsets = [0, 0, 7], sizes = [1, 8, 1], strides = [1, 1, 1]} : vector<4x8x8xf32> to vector<1x8x1xf32>
    %73 = vector.shape_cast %72 : vector<1x8x1xf32> to vector<8x1xf32>
    %74 = vector.shape_cast %73 : vector<8x1xf32> to vector<8x1xf32>
    %75 = vector.broadcast %74 : vector<8x1xf32> to vector<8x128xf32>
    %76 = vector.extract_strided_slice %4 {offsets = [7, 0], sizes = [1, 128], strides = [1, 1]} : vector<8x128xf32> to vector<1x128xf32>
    %77 = vector.shape_cast %76 : vector<1x128xf32> to vector<1x128xf32>
    %78 = vector.broadcast %77 : vector<1x128xf32> to vector<8x128xf32>
    %79 = arith.mulf %75, %78 : vector<8x128xf32>
    %80 = arith.addf %71, %79 : vector<8x128xf32>
    %cst = arith.constant 0.000000e+00 : f32
    %81 = vector.broadcast %cst : f32 to vector<8x128xf32>
    %82 = arith.maximumf %80, %81 : vector<8x128xf32>
    %83 = vector.extract_strided_slice %1 {offsets = [1, 0, 0], sizes = [1, 8, 1], strides = [1, 1, 1]} : vector<4x8x1xf32> to vector<1x8x1xf32>
    %84 = vector.shape_cast %83 : vector<1x8x1xf32> to vector<8x1xf32>
    %85 = vector.shape_cast %84 : vector<8x1xf32> to vector<8x1xf32>
    %86 = vector.broadcast %85 : vector<8x1xf32> to vector<8x128xf32>
    %87 = vector.extract_strided_slice %0 {offsets = [1, 0, 0], sizes = [1, 8, 1], strides = [1, 1, 1]} : vector<4x8x8xf32> to vector<1x8x1xf32>
    %88 = vector.shape_cast %87 : vector<1x8x1xf32> to vector<8x1xf32>
    %89 = vector.shape_cast %88 : vector<8x1xf32> to vector<8x1xf32>
    %90 = vector.broadcast %89 : vector<8x1xf32> to vector<8x128xf32>
    %91 = vector.extract_strided_slice %82 {offsets = [0, 0], sizes = [1, 128], strides = [1, 1]} : vector<8x128xf32> to vector<1x128xf32>
    %92 = vector.shape_cast %91 : vector<1x128xf32> to vector<1x128xf32>
    %93 = vector.broadcast %92 : vector<1x128xf32> to vector<8x128xf32>
    %94 = arith.mulf %90, %93 : vector<8x128xf32>
    %95 = arith.addf %86, %94 : vector<8x128xf32>
    %96 = vector.extract_strided_slice %0 {offsets = [1, 0, 1], sizes = [1, 8, 1], strides = [1, 1, 1]} : vector<4x8x8xf32> to vector<1x8x1xf32>
    %97 = vector.shape_cast %96 : vector<1x8x1xf32> to vector<8x1xf32>
    %98 = vector.shape_cast %97 : vector<8x1xf32> to vector<8x1xf32>
    %99 = vector.broadcast %98 : vector<8x1xf32> to vector<8x128xf32>
    %100 = vector.extract_strided_slice %82 {offsets = [1, 0], sizes = [1, 128], strides = [1, 1]} : vector<8x128xf32> to vector<1x128xf32>
    %101 = vector.shape_cast %100 : vector<1x128xf32> to vector<1x128xf32>
    %102 = vector.broadcast %101 : vector<1x128xf32> to vector<8x128xf32>
    %103 = arith.mulf %99, %102 : vector<8x128xf32>
    %104 = arith.addf %95, %103 : vector<8x128xf32>
    %105 = vector.extract_strided_slice %0 {offsets = [1, 0, 2], sizes = [1, 8, 1], strides = [1, 1, 1]} : vector<4x8x8xf32> to vector<1x8x1xf32>
    %106 = vector.shape_cast %105 : vector<1x8x1xf32> to vector<8x1xf32>
    %107 = vector.shape_cast %106 : vector<8x1xf32> to vector<8x1xf32>
    %108 = vector.broadcast %107 : vector<8x1xf32> to vector<8x128xf32>
    %109 = vector.extract_strided_slice %82 {offsets = [2, 0], sizes = [1, 128], strides = [1, 1]} : vector<8x128xf32> to vector<1x128xf32>
    %110 = vector.shape_cast %109 : vector<1x128xf32> to vector<1x128xf32>
    %111 = vector.broadcast %110 : vector<1x128xf32> to vector<8x128xf32>
    %112 = arith.mulf %108, %111 : vector<8x128xf32>
    %113 = arith.addf %104, %112 : vector<8x128xf32>
    %114 = vector.extract_strided_slice %0 {offsets = [1, 0, 3], sizes = [1, 8, 1], strides = [1, 1, 1]} : vector<4x8x8xf32> to vector<1x8x1xf32>
    %115 = vector.shape_cast %114 : vector<1x8x1xf32> to vector<8x1xf32>
    %116 = vector.shape_cast %115 : vector<8x1xf32> to vector<8x1xf32>
    %117 = vector.broadcast %116 : vector<8x1xf32> to vector<8x128xf32>
    %118 = vector.extract_strided_slice %82 {offsets = [3, 0], sizes = [1, 128], strides = [1, 1]} : vector<8x128xf32> to vector<1x128xf32>
    %119 = vector.shape_cast %118 : vector<1x128xf32> to vector<1x128xf32>
    %120 = vector.broadcast %119 : vector<1x128xf32> to vector<8x128xf32>
    %121 = arith.mulf %117, %120 : vector<8x128xf32>
    %122 = arith.addf %113, %121 : vector<8x128xf32>
    %123 = vector.extract_strided_slice %0 {offsets = [1, 0, 4], sizes = [1, 8, 1], strides = [1, 1, 1]} : vector<4x8x8xf32> to vector<1x8x1xf32>
    %124 = vector.shape_cast %123 : vector<1x8x1xf32> to vector<8x1xf32>
    %125 = vector.shape_cast %124 : vector<8x1xf32> to vector<8x1xf32>
    %126 = vector.broadcast %125 : vector<8x1xf32> to vector<8x128xf32>
    %127 = vector.extract_strided_slice %82 {offsets = [4, 0], sizes = [1, 128], strides = [1, 1]} : vector<8x128xf32> to vector<1x128xf32>
    %128 = vector.shape_cast %127 : vector<1x128xf32> to vector<1x128xf32>
    %129 = vector.broadcast %128 : vector<1x128xf32> to vector<8x128xf32>
    %130 = arith.mulf %126, %129 : vector<8x128xf32>
    %131 = arith.addf %122, %130 : vector<8x128xf32>
    %132 = vector.extract_strided_slice %0 {offsets = [1, 0, 5], sizes = [1, 8, 1], strides = [1, 1, 1]} : vector<4x8x8xf32> to vector<1x8x1xf32>
    %133 = vector.shape_cast %132 : vector<1x8x1xf32> to vector<8x1xf32>
    %134 = vector.shape_cast %133 : vector<8x1xf32> to vector<8x1xf32>
    %135 = vector.broadcast %134 : vector<8x1xf32> to vector<8x128xf32>
    %136 = vector.extract_strided_slice %82 {offsets = [5, 0], sizes = [1, 128], strides = [1, 1]} : vector<8x128xf32> to vector<1x128xf32>
    %137 = vector.shape_cast %136 : vector<1x128xf32> to vector<1x128xf32>
    %138 = vector.broadcast %137 : vector<1x128xf32> to vector<8x128xf32>
    %139 = arith.mulf %135, %138 : vector<8x128xf32>
    %140 = arith.addf %131, %139 : vector<8x128xf32>
    %141 = vector.extract_strided_slice %0 {offsets = [1, 0, 6], sizes = [1, 8, 1], strides = [1, 1, 1]} : vector<4x8x8xf32> to vector<1x8x1xf32>
    %142 = vector.shape_cast %141 : vector<1x8x1xf32> to vector<8x1xf32>
    %143 = vector.shape_cast %142 : vector<8x1xf32> to vector<8x1xf32>
    %144 = vector.broadcast %143 : vector<8x1xf32> to vector<8x128xf32>
    %145 = vector.extract_strided_slice %82 {offsets = [6, 0], sizes = [1, 128], strides = [1, 1]} : vector<8x128xf32> to vector<1x128xf32>
    %146 = vector.shape_cast %145 : vector<1x128xf32> to vector<1x128xf32>
    %147 = vector.broadcast %146 : vector<1x128xf32> to vector<8x128xf32>
    %148 = arith.mulf %144, %147 : vector<8x128xf32>
    %149 = arith.addf %140, %148 : vector<8x128xf32>
    %150 = vector.extract_strided_slice %0 {offsets = [1, 0, 7], sizes = [1, 8, 1], strides = [1, 1, 1]} : vector<4x8x8xf32> to vector<1x8x1xf32>
    %151 = vector.shape_cast %150 : vector<1x8x1xf32> to vector<8x1xf32>
    %152 = vector.shape_cast %151 : vector<8x1xf32> to vector<8x1xf32>
    %153 = vector.broadcast %152 : vector<8x1xf32> to vector<8x128xf32>
    %154 = vector.extract_strided_slice %82 {offsets = [7, 0], sizes = [1, 128], strides = [1, 1]} : vector<8x128xf32> to vector<1x128xf32>
    %155 = vector.shape_cast %154 : vector<1x128xf32> to vector<1x128xf32>
    %156 = vector.broadcast %155 : vector<1x128xf32> to vector<8x128xf32>
    %157 = arith.mulf %153, %156 : vector<8x128xf32>
    %158 = arith.addf %149, %157 : vector<8x128xf32>
    %cst_8 = arith.constant 0.000000e+00 : f32
    %159 = vector.broadcast %cst_8 : f32 to vector<8x128xf32>
    %160 = arith.maximumf %158, %159 : vector<8x128xf32>
    %161 = vector.extract_strided_slice %1 {offsets = [2, 0, 0], sizes = [1, 8, 1], strides = [1, 1, 1]} : vector<4x8x1xf32> to vector<1x8x1xf32>
    %162 = vector.shape_cast %161 : vector<1x8x1xf32> to vector<8x1xf32>
    %163 = vector.shape_cast %162 : vector<8x1xf32> to vector<8x1xf32>
    %164 = vector.broadcast %163 : vector<8x1xf32> to vector<8x128xf32>
    %165 = vector.extract_strided_slice %0 {offsets = [2, 0, 0], sizes = [1, 8, 1], strides = [1, 1, 1]} : vector<4x8x8xf32> to vector<1x8x1xf32>
    %166 = vector.shape_cast %165 : vector<1x8x1xf32> to vector<8x1xf32>
    %167 = vector.shape_cast %166 : vector<8x1xf32> to vector<8x1xf32>
    %168 = vector.broadcast %167 : vector<8x1xf32> to vector<8x128xf32>
    %169 = vector.extract_strided_slice %160 {offsets = [0, 0], sizes = [1, 128], strides = [1, 1]} : vector<8x128xf32> to vector<1x128xf32>
    %170 = vector.shape_cast %169 : vector<1x128xf32> to vector<1x128xf32>
    %171 = vector.broadcast %170 : vector<1x128xf32> to vector<8x128xf32>
    %172 = arith.mulf %168, %171 : vector<8x128xf32>
    %173 = arith.addf %164, %172 : vector<8x128xf32>
    %174 = vector.extract_strided_slice %0 {offsets = [2, 0, 1], sizes = [1, 8, 1], strides = [1, 1, 1]} : vector<4x8x8xf32> to vector<1x8x1xf32>
    %175 = vector.shape_cast %174 : vector<1x8x1xf32> to vector<8x1xf32>
    %176 = vector.shape_cast %175 : vector<8x1xf32> to vector<8x1xf32>
    %177 = vector.broadcast %176 : vector<8x1xf32> to vector<8x128xf32>
    %178 = vector.extract_strided_slice %160 {offsets = [1, 0], sizes = [1, 128], strides = [1, 1]} : vector<8x128xf32> to vector<1x128xf32>
    %179 = vector.shape_cast %178 : vector<1x128xf32> to vector<1x128xf32>
    %180 = vector.broadcast %179 : vector<1x128xf32> to vector<8x128xf32>
    %181 = arith.mulf %177, %180 : vector<8x128xf32>
    %182 = arith.addf %173, %181 : vector<8x128xf32>
    %183 = vector.extract_strided_slice %0 {offsets = [2, 0, 2], sizes = [1, 8, 1], strides = [1, 1, 1]} : vector<4x8x8xf32> to vector<1x8x1xf32>
    %184 = vector.shape_cast %183 : vector<1x8x1xf32> to vector<8x1xf32>
    %185 = vector.shape_cast %184 : vector<8x1xf32> to vector<8x1xf32>
    %186 = vector.broadcast %185 : vector<8x1xf32> to vector<8x128xf32>
    %187 = vector.extract_strided_slice %160 {offsets = [2, 0], sizes = [1, 128], strides = [1, 1]} : vector<8x128xf32> to vector<1x128xf32>
    %188 = vector.shape_cast %187 : vector<1x128xf32> to vector<1x128xf32>
    %189 = vector.broadcast %188 : vector<1x128xf32> to vector<8x128xf32>
    %190 = arith.mulf %186, %189 : vector<8x128xf32>
    %191 = arith.addf %182, %190 : vector<8x128xf32>
    %192 = vector.extract_strided_slice %0 {offsets = [2, 0, 3], sizes = [1, 8, 1], strides = [1, 1, 1]} : vector<4x8x8xf32> to vector<1x8x1xf32>
    %193 = vector.shape_cast %192 : vector<1x8x1xf32> to vector<8x1xf32>
    %194 = vector.shape_cast %193 : vector<8x1xf32> to vector<8x1xf32>
    %195 = vector.broadcast %194 : vector<8x1xf32> to vector<8x128xf32>
    %196 = vector.extract_strided_slice %160 {offsets = [3, 0], sizes = [1, 128], strides = [1, 1]} : vector<8x128xf32> to vector<1x128xf32>
    %197 = vector.shape_cast %196 : vector<1x128xf32> to vector<1x128xf32>
    %198 = vector.broadcast %197 : vector<1x128xf32> to vector<8x128xf32>
    %199 = arith.mulf %195, %198 : vector<8x128xf32>
    %200 = arith.addf %191, %199 : vector<8x128xf32>
    %201 = vector.extract_strided_slice %0 {offsets = [2, 0, 4], sizes = [1, 8, 1], strides = [1, 1, 1]} : vector<4x8x8xf32> to vector<1x8x1xf32>
    %202 = vector.shape_cast %201 : vector<1x8x1xf32> to vector<8x1xf32>
    %203 = vector.shape_cast %202 : vector<8x1xf32> to vector<8x1xf32>
    %204 = vector.broadcast %203 : vector<8x1xf32> to vector<8x128xf32>
    %205 = vector.extract_strided_slice %160 {offsets = [4, 0], sizes = [1, 128], strides = [1, 1]} : vector<8x128xf32> to vector<1x128xf32>
    %206 = vector.shape_cast %205 : vector<1x128xf32> to vector<1x128xf32>
    %207 = vector.broadcast %206 : vector<1x128xf32> to vector<8x128xf32>
    %208 = arith.mulf %204, %207 : vector<8x128xf32>
    %209 = arith.addf %200, %208 : vector<8x128xf32>
    %210 = vector.extract_strided_slice %0 {offsets = [2, 0, 5], sizes = [1, 8, 1], strides = [1, 1, 1]} : vector<4x8x8xf32> to vector<1x8x1xf32>
    %211 = vector.shape_cast %210 : vector<1x8x1xf32> to vector<8x1xf32>
    %212 = vector.shape_cast %211 : vector<8x1xf32> to vector<8x1xf32>
    %213 = vector.broadcast %212 : vector<8x1xf32> to vector<8x128xf32>
    %214 = vector.extract_strided_slice %160 {offsets = [5, 0], sizes = [1, 128], strides = [1, 1]} : vector<8x128xf32> to vector<1x128xf32>
    %215 = vector.shape_cast %214 : vector<1x128xf32> to vector<1x128xf32>
    %216 = vector.broadcast %215 : vector<1x128xf32> to vector<8x128xf32>
    %217 = arith.mulf %213, %216 : vector<8x128xf32>
    %218 = arith.addf %209, %217 : vector<8x128xf32>
    %219 = vector.extract_strided_slice %0 {offsets = [2, 0, 6], sizes = [1, 8, 1], strides = [1, 1, 1]} : vector<4x8x8xf32> to vector<1x8x1xf32>
    %220 = vector.shape_cast %219 : vector<1x8x1xf32> to vector<8x1xf32>
    %221 = vector.shape_cast %220 : vector<8x1xf32> to vector<8x1xf32>
    %222 = vector.broadcast %221 : vector<8x1xf32> to vector<8x128xf32>
    %223 = vector.extract_strided_slice %160 {offsets = [6, 0], sizes = [1, 128], strides = [1, 1]} : vector<8x128xf32> to vector<1x128xf32>
    %224 = vector.shape_cast %223 : vector<1x128xf32> to vector<1x128xf32>
    %225 = vector.broadcast %224 : vector<1x128xf32> to vector<8x128xf32>
    %226 = arith.mulf %222, %225 : vector<8x128xf32>
    %227 = arith.addf %218, %226 : vector<8x128xf32>
    %228 = vector.extract_strided_slice %0 {offsets = [2, 0, 7], sizes = [1, 8, 1], strides = [1, 1, 1]} : vector<4x8x8xf32> to vector<1x8x1xf32>
    %229 = vector.shape_cast %228 : vector<1x8x1xf32> to vector<8x1xf32>
    %230 = vector.shape_cast %229 : vector<8x1xf32> to vector<8x1xf32>
    %231 = vector.broadcast %230 : vector<8x1xf32> to vector<8x128xf32>
    %232 = vector.extract_strided_slice %160 {offsets = [7, 0], sizes = [1, 128], strides = [1, 1]} : vector<8x128xf32> to vector<1x128xf32>
    %233 = vector.shape_cast %232 : vector<1x128xf32> to vector<1x128xf32>
    %234 = vector.broadcast %233 : vector<1x128xf32> to vector<8x128xf32>
    %235 = arith.mulf %231, %234 : vector<8x128xf32>
    %236 = arith.addf %227, %235 : vector<8x128xf32>
    %cst_9 = arith.constant 0.000000e+00 : f32
    %237 = vector.broadcast %cst_9 : f32 to vector<8x128xf32>
    %238 = arith.maximumf %236, %237 : vector<8x128xf32>
    %239 = arith.addf %238, %4 : vector<8x128xf32>
    %240 = vector.extract_strided_slice %1 {offsets = [3, 0, 0], sizes = [1, 8, 1], strides = [1, 1, 1]} : vector<4x8x1xf32> to vector<1x8x1xf32>
    %241 = vector.shape_cast %240 : vector<1x8x1xf32> to vector<8x1xf32>
    %242 = vector.shape_cast %241 : vector<8x1xf32> to vector<8x1xf32>
    %243 = vector.broadcast %242 : vector<8x1xf32> to vector<8x128xf32>
    %244 = vector.extract_strided_slice %0 {offsets = [3, 0, 0], sizes = [1, 8, 1], strides = [1, 1, 1]} : vector<4x8x8xf32> to vector<1x8x1xf32>
    %245 = vector.shape_cast %244 : vector<1x8x1xf32> to vector<8x1xf32>
    %246 = vector.shape_cast %245 : vector<8x1xf32> to vector<8x1xf32>
    %247 = vector.broadcast %246 : vector<8x1xf32> to vector<8x128xf32>
    %248 = vector.extract_strided_slice %239 {offsets = [0, 0], sizes = [1, 128], strides = [1, 1]} : vector<8x128xf32> to vector<1x128xf32>
    %249 = vector.shape_cast %248 : vector<1x128xf32> to vector<1x128xf32>
    %250 = vector.broadcast %249 : vector<1x128xf32> to vector<8x128xf32>
    %251 = arith.mulf %247, %250 : vector<8x128xf32>
    %252 = arith.addf %243, %251 : vector<8x128xf32>
    %253 = vector.extract_strided_slice %0 {offsets = [3, 0, 1], sizes = [1, 8, 1], strides = [1, 1, 1]} : vector<4x8x8xf32> to vector<1x8x1xf32>
    %254 = vector.shape_cast %253 : vector<1x8x1xf32> to vector<8x1xf32>
    %255 = vector.shape_cast %254 : vector<8x1xf32> to vector<8x1xf32>
    %256 = vector.broadcast %255 : vector<8x1xf32> to vector<8x128xf32>
    %257 = vector.extract_strided_slice %239 {offsets = [1, 0], sizes = [1, 128], strides = [1, 1]} : vector<8x128xf32> to vector<1x128xf32>
    %258 = vector.shape_cast %257 : vector<1x128xf32> to vector<1x128xf32>
    %259 = vector.broadcast %258 : vector<1x128xf32> to vector<8x128xf32>
    %260 = arith.mulf %256, %259 : vector<8x128xf32>
    %261 = arith.addf %252, %260 : vector<8x128xf32>
    %262 = vector.extract_strided_slice %0 {offsets = [3, 0, 2], sizes = [1, 8, 1], strides = [1, 1, 1]} : vector<4x8x8xf32> to vector<1x8x1xf32>
    %263 = vector.shape_cast %262 : vector<1x8x1xf32> to vector<8x1xf32>
    %264 = vector.shape_cast %263 : vector<8x1xf32> to vector<8x1xf32>
    %265 = vector.broadcast %264 : vector<8x1xf32> to vector<8x128xf32>
    %266 = vector.extract_strided_slice %239 {offsets = [2, 0], sizes = [1, 128], strides = [1, 1]} : vector<8x128xf32> to vector<1x128xf32>
    %267 = vector.shape_cast %266 : vector<1x128xf32> to vector<1x128xf32>
    %268 = vector.broadcast %267 : vector<1x128xf32> to vector<8x128xf32>
    %269 = arith.mulf %265, %268 : vector<8x128xf32>
    %270 = arith.addf %261, %269 : vector<8x128xf32>
    %271 = vector.extract_strided_slice %0 {offsets = [3, 0, 3], sizes = [1, 8, 1], strides = [1, 1, 1]} : vector<4x8x8xf32> to vector<1x8x1xf32>
    %272 = vector.shape_cast %271 : vector<1x8x1xf32> to vector<8x1xf32>
    %273 = vector.shape_cast %272 : vector<8x1xf32> to vector<8x1xf32>
    %274 = vector.broadcast %273 : vector<8x1xf32> to vector<8x128xf32>
    %275 = vector.extract_strided_slice %239 {offsets = [3, 0], sizes = [1, 128], strides = [1, 1]} : vector<8x128xf32> to vector<1x128xf32>
    %276 = vector.shape_cast %275 : vector<1x128xf32> to vector<1x128xf32>
    %277 = vector.broadcast %276 : vector<1x128xf32> to vector<8x128xf32>
    %278 = arith.mulf %274, %277 : vector<8x128xf32>
    %279 = arith.addf %270, %278 : vector<8x128xf32>
    %280 = vector.extract_strided_slice %0 {offsets = [3, 0, 4], sizes = [1, 8, 1], strides = [1, 1, 1]} : vector<4x8x8xf32> to vector<1x8x1xf32>
    %281 = vector.shape_cast %280 : vector<1x8x1xf32> to vector<8x1xf32>
    %282 = vector.shape_cast %281 : vector<8x1xf32> to vector<8x1xf32>
    %283 = vector.broadcast %282 : vector<8x1xf32> to vector<8x128xf32>
    %284 = vector.extract_strided_slice %239 {offsets = [4, 0], sizes = [1, 128], strides = [1, 1]} : vector<8x128xf32> to vector<1x128xf32>
    %285 = vector.shape_cast %284 : vector<1x128xf32> to vector<1x128xf32>
    %286 = vector.broadcast %285 : vector<1x128xf32> to vector<8x128xf32>
    %287 = arith.mulf %283, %286 : vector<8x128xf32>
    %288 = arith.addf %279, %287 : vector<8x128xf32>
    %289 = vector.extract_strided_slice %0 {offsets = [3, 0, 5], sizes = [1, 8, 1], strides = [1, 1, 1]} : vector<4x8x8xf32> to vector<1x8x1xf32>
    %290 = vector.shape_cast %289 : vector<1x8x1xf32> to vector<8x1xf32>
    %291 = vector.shape_cast %290 : vector<8x1xf32> to vector<8x1xf32>
    %292 = vector.broadcast %291 : vector<8x1xf32> to vector<8x128xf32>
    %293 = vector.extract_strided_slice %239 {offsets = [5, 0], sizes = [1, 128], strides = [1, 1]} : vector<8x128xf32> to vector<1x128xf32>
    %294 = vector.shape_cast %293 : vector<1x128xf32> to vector<1x128xf32>
    %295 = vector.broadcast %294 : vector<1x128xf32> to vector<8x128xf32>
    %296 = arith.mulf %292, %295 : vector<8x128xf32>
    %297 = arith.addf %288, %296 : vector<8x128xf32>
    %298 = vector.extract_strided_slice %0 {offsets = [3, 0, 6], sizes = [1, 8, 1], strides = [1, 1, 1]} : vector<4x8x8xf32> to vector<1x8x1xf32>
    %299 = vector.shape_cast %298 : vector<1x8x1xf32> to vector<8x1xf32>
    %300 = vector.shape_cast %299 : vector<8x1xf32> to vector<8x1xf32>
    %301 = vector.broadcast %300 : vector<8x1xf32> to vector<8x128xf32>
    %302 = vector.extract_strided_slice %239 {offsets = [6, 0], sizes = [1, 128], strides = [1, 1]} : vector<8x128xf32> to vector<1x128xf32>
    %303 = vector.shape_cast %302 : vector<1x128xf32> to vector<1x128xf32>
    %304 = vector.broadcast %303 : vector<1x128xf32> to vector<8x128xf32>
    %305 = arith.mulf %301, %304 : vector<8x128xf32>
    %306 = arith.addf %297, %305 : vector<8x128xf32>
    %307 = vector.extract_strided_slice %0 {offsets = [3, 0, 7], sizes = [1, 8, 1], strides = [1, 1, 1]} : vector<4x8x8xf32> to vector<1x8x1xf32>
    %308 = vector.shape_cast %307 : vector<1x8x1xf32> to vector<8x1xf32>
    %309 = vector.shape_cast %308 : vector<8x1xf32> to vector<8x1xf32>
    %310 = vector.broadcast %309 : vector<8x1xf32> to vector<8x128xf32>
    %311 = vector.extract_strided_slice %239 {offsets = [7, 0], sizes = [1, 128], strides = [1, 1]} : vector<8x128xf32> to vector<1x128xf32>
    %312 = vector.shape_cast %311 : vector<1x128xf32> to vector<1x128xf32>
    %313 = vector.broadcast %312 : vector<1x128xf32> to vector<8x128xf32>
    %314 = arith.mulf %310, %313 : vector<8x128xf32>
    %315 = arith.addf %306, %314 : vector<8x128xf32>
    %cst_10 = arith.constant 0.000000e+00 : f32
    %316 = vector.broadcast %cst_10 : f32 to vector<8x128xf32>
    %317 = arith.maximumf %315, %316 : vector<8x128xf32>
    %c0_11 = arith.constant 0 : index
    %c0_12 = arith.constant 0 : index
    %c0_13 = arith.constant 0 : index
    %318 = vector.load %arg5[%c0_11, %c0_12, %c0_13] : memref<2x8x128xf32, #tpu.memory_space<vmem>>, vector<1x8x128xf32>
    %319 = vector.shape_cast %318 : vector<1x8x128xf32> to vector<8x128xf32>
    %320 = vector.shape_cast %317 : vector<8x128xf32> to vector<1x8x128xf32>
    tpu.vector_store %arg5[%c0_11, %c0_12, %c0_13], %320 {strides = array<i32>} : memref<2x8x128xf32, #tpu.memory_space<vmem>>, vector<1x8x128xf32>,
    %c1 = arith.constant 1 : index
    %c0_14 = arith.constant 0 : index
    %c0_15 = arith.constant 0 : index
    %321 = vector.load %arg2[%c1, %c0_14, %c0_15] : memref<2x8x128xf32, #tpu.memory_space<vmem>>, vector<1x8x128xf32>
    %322 = vector.shape_cast %321 : vector<1x8x128xf32> to vector<8x128xf32>
    %323 = arith.addf %322, %322 : vector<8x128xf32>
    %324 = vector.extract_strided_slice %1 {offsets = [0, 0, 0], sizes = [1, 8, 1], strides = [1, 1, 1]} : vector<4x8x1xf32> to vector<1x8x1xf32>
    %325 = vector.shape_cast %324 : vector<1x8x1xf32> to vector<8x1xf32>
    %326 = vector.shape_cast %325 : vector<8x1xf32> to vector<8x1xf32>
    %327 = vector.broadcast %326 : vector<8x1xf32> to vector<8x128xf32>
    %328 = vector.extract_strided_slice %0 {offsets = [0, 0, 0], sizes = [1, 8, 1], strides = [1, 1, 1]} : vector<4x8x8xf32> to vector<1x8x1xf32>
    %329 = vector.shape_cast %328 : vector<1x8x1xf32> to vector<8x1xf32>
    %330 = vector.shape_cast %329 : vector<8x1xf32> to vector<8x1xf32>
    %331 = vector.broadcast %330 : vector<8x1xf32> to vector<8x128xf32>
    %332 = vector.extract_strided_slice %323 {offsets = [0, 0], sizes = [1, 128], strides = [1, 1]} : vector<8x128xf32> to vector<1x128xf32>
    %333 = vector.shape_cast %332 : vector<1x128xf32> to vector<1x128xf32>
    %334 = vector.broadcast %333 : vector<1x128xf32> to vector<8x128xf32>
    %335 = arith.mulf %331, %334 : vector<8x128xf32>
    %336 = arith.addf %327, %335 : vector<8x128xf32>
    %337 = vector.extract_strided_slice %0 {offsets = [0, 0, 1], sizes = [1, 8, 1], strides = [1, 1, 1]} : vector<4x8x8xf32> to vector<1x8x1xf32>
    %338 = vector.shape_cast %337 : vector<1x8x1xf32> to vector<8x1xf32>
    %339 = vector.shape_cast %338 : vector<8x1xf32> to vector<8x1xf32>
    %340 = vector.broadcast %339 : vector<8x1xf32> to vector<8x128xf32>
    %341 = vector.extract_strided_slice %323 {offsets = [1, 0], sizes = [1, 128], strides = [1, 1]} : vector<8x128xf32> to vector<1x128xf32>
    %342 = vector.shape_cast %341 : vector<1x128xf32> to vector<1x128xf32>
    %343 = vector.broadcast %342 : vector<1x128xf32> to vector<8x128xf32>
    %344 = arith.mulf %340, %343 : vector<8x128xf32>
    %345 = arith.addf %336, %344 : vector<8x128xf32>
    %346 = vector.extract_strided_slice %0 {offsets = [0, 0, 2], sizes = [1, 8, 1], strides = [1, 1, 1]} : vector<4x8x8xf32> to vector<1x8x1xf32>
    %347 = vector.shape_cast %346 : vector<1x8x1xf32> to vector<8x1xf32>
    %348 = vector.shape_cast %347 : vector<8x1xf32> to vector<8x1xf32>
    %349 = vector.broadcast %348 : vector<8x1xf32> to vector<8x128xf32>
    %350 = vector.extract_strided_slice %323 {offsets = [2, 0], sizes = [1, 128], strides = [1, 1]} : vector<8x128xf32> to vector<1x128xf32>
    %351 = vector.shape_cast %350 : vector<1x128xf32> to vector<1x128xf32>
    %352 = vector.broadcast %351 : vector<1x128xf32> to vector<8x128xf32>
    %353 = arith.mulf %349, %352 : vector<8x128xf32>
    %354 = arith.addf %345, %353 : vector<8x128xf32>
    %355 = vector.extract_strided_slice %0 {offsets = [0, 0, 3], sizes = [1, 8, 1], strides = [1, 1, 1]} : vector<4x8x8xf32> to vector<1x8x1xf32>
    %356 = vector.shape_cast %355 : vector<1x8x1xf32> to vector<8x1xf32>
    %357 = vector.shape_cast %356 : vector<8x1xf32> to vector<8x1xf32>
    %358 = vector.broadcast %357 : vector<8x1xf32> to vector<8x128xf32>
    %359 = vector.extract_strided_slice %323 {offsets = [3, 0], sizes = [1, 128], strides = [1, 1]} : vector<8x128xf32> to vector<1x128xf32>
    %360 = vector.shape_cast %359 : vector<1x128xf32> to vector<1x128xf32>
    %361 = vector.broadcast %360 : vector<1x128xf32> to vector<8x128xf32>
    %362 = arith.mulf %358, %361 : vector<8x128xf32>
    %363 = arith.addf %354, %362 : vector<8x128xf32>
    %364 = vector.extract_strided_slice %0 {offsets = [0, 0, 4], sizes = [1, 8, 1], strides = [1, 1, 1]} : vector<4x8x8xf32> to vector<1x8x1xf32>
    %365 = vector.shape_cast %364 : vector<1x8x1xf32> to vector<8x1xf32>
    %366 = vector.shape_cast %365 : vector<8x1xf32> to vector<8x1xf32>
    %367 = vector.broadcast %366 : vector<8x1xf32> to vector<8x128xf32>
    %368 = vector.extract_strided_slice %323 {offsets = [4, 0], sizes = [1, 128], strides = [1, 1]} : vector<8x128xf32> to vector<1x128xf32>
    %369 = vector.shape_cast %368 : vector<1x128xf32> to vector<1x128xf32>
    %370 = vector.broadcast %369 : vector<1x128xf32> to vector<8x128xf32>
    %371 = arith.mulf %367, %370 : vector<8x128xf32>
    %372 = arith.addf %363, %371 : vector<8x128xf32>
    %373 = vector.extract_strided_slice %0 {offsets = [0, 0, 5], sizes = [1, 8, 1], strides = [1, 1, 1]} : vector<4x8x8xf32> to vector<1x8x1xf32>
    %374 = vector.shape_cast %373 : vector<1x8x1xf32> to vector<8x1xf32>
    %375 = vector.shape_cast %374 : vector<8x1xf32> to vector<8x1xf32>
    %376 = vector.broadcast %375 : vector<8x1xf32> to vector<8x128xf32>
    %377 = vector.extract_strided_slice %323 {offsets = [5, 0], sizes = [1, 128], strides = [1, 1]} : vector<8x128xf32> to vector<1x128xf32>
    %378 = vector.shape_cast %377 : vector<1x128xf32> to vector<1x128xf32>
    %379 = vector.broadcast %378 : vector<1x128xf32> to vector<8x128xf32>
    %380 = arith.mulf %376, %379 : vector<8x128xf32>
    %381 = arith.addf %372, %380 : vector<8x128xf32>
    %382 = vector.extract_strided_slice %0 {offsets = [0, 0, 6], sizes = [1, 8, 1], strides = [1, 1, 1]} : vector<4x8x8xf32> to vector<1x8x1xf32>
    %383 = vector.shape_cast %382 : vector<1x8x1xf32> to vector<8x1xf32>
    %384 = vector.shape_cast %383 : vector<8x1xf32> to vector<8x1xf32>
    %385 = vector.broadcast %384 : vector<8x1xf32> to vector<8x128xf32>
    %386 = vector.extract_strided_slice %323 {offsets = [6, 0], sizes = [1, 128], strides = [1, 1]} : vector<8x128xf32> to vector<1x128xf32>
    %387 = vector.shape_cast %386 : vector<1x128xf32> to vector<1x128xf32>
    %388 = vector.broadcast %387 : vector<1x128xf32> to vector<8x128xf32>
    %389 = arith.mulf %385, %388 : vector<8x128xf32>
    %390 = arith.addf %381, %389 : vector<8x128xf32>
    %391 = vector.extract_strided_slice %0 {offsets = [0, 0, 7], sizes = [1, 8, 1], strides = [1, 1, 1]} : vector<4x8x8xf32> to vector<1x8x1xf32>
    %392 = vector.shape_cast %391 : vector<1x8x1xf32> to vector<8x1xf32>
    %393 = vector.shape_cast %392 : vector<8x1xf32> to vector<8x1xf32>
    %394 = vector.broadcast %393 : vector<8x1xf32> to vector<8x128xf32>
    %395 = vector.extract_strided_slice %323 {offsets = [7, 0], sizes = [1, 128], strides = [1, 1]} : vector<8x128xf32> to vector<1x128xf32>
    %396 = vector.shape_cast %395 : vector<1x128xf32> to vector<1x128xf32>
    %397 = vector.broadcast %396 : vector<1x128xf32> to vector<8x128xf32>
    %398 = arith.mulf %394, %397 : vector<8x128xf32>
    %399 = arith.addf %390, %398 : vector<8x128xf32>
    %cst_16 = arith.constant 0.000000e+00 : f32
    %400 = vector.broadcast %cst_16 : f32 to vector<8x128xf32>
    %401 = arith.maximumf %399, %400 : vector<8x128xf32>
    %402 = vector.extract_strided_slice %1 {offsets = [1, 0, 0], sizes = [1, 8, 1], strides = [1, 1, 1]} : vector<4x8x1xf32> to vector<1x8x1xf32>
    %403 = vector.shape_cast %402 : vector<1x8x1xf32> to vector<8x1xf32>
    %404 = vector.shape_cast %403 : vector<8x1xf32> to vector<8x1xf32>
    %405 = vector.broadcast %404 : vector<8x1xf32> to vector<8x128xf32>
    %406 = vector.extract_strided_slice %0 {offsets = [1, 0, 0], sizes = [1, 8, 1], strides = [1, 1, 1]} : vector<4x8x8xf32> to vector<1x8x1xf32>
    %407 = vector.shape_cast %406 : vector<1x8x1xf32> to vector<8x1xf32>
    %408 = vector.shape_cast %407 : vector<8x1xf32> to vector<8x1xf32>
    %409 = vector.broadcast %408 : vector<8x1xf32> to vector<8x128xf32>
    %410 = vector.extract_strided_slice %401 {offsets = [0, 0], sizes = [1, 128], strides = [1, 1]} : vector<8x128xf32> to vector<1x128xf32>
    %411 = vector.shape_cast %410 : vector<1x128xf32> to vector<1x128xf32>
    %412 = vector.broadcast %411 : vector<1x128xf32> to vector<8x128xf32>
    %413 = arith.mulf %409, %412 : vector<8x128xf32>
    %414 = arith.addf %405, %413 : vector<8x128xf32>
    %415 = vector.extract_strided_slice %0 {offsets = [1, 0, 1], sizes = [1, 8, 1], strides = [1, 1, 1]} : vector<4x8x8xf32> to vector<1x8x1xf32>
    %416 = vector.shape_cast %415 : vector<1x8x1xf32> to vector<8x1xf32>
    %417 = vector.shape_cast %416 : vector<8x1xf32> to vector<8x1xf32>
    %418 = vector.broadcast %417 : vector<8x1xf32> to vector<8x128xf32>
    %419 = vector.extract_strided_slice %401 {offsets = [1, 0], sizes = [1, 128], strides = [1, 1]} : vector<8x128xf32> to vector<1x128xf32>
    %420 = vector.shape_cast %419 : vector<1x128xf32> to vector<1x128xf32>
    %421 = vector.broadcast %420 : vector<1x128xf32> to vector<8x128xf32>
    %422 = arith.mulf %418, %421 : vector<8x128xf32>
    %423 = arith.addf %414, %422 : vector<8x128xf32>
    %424 = vector.extract_strided_slice %0 {offsets = [1, 0, 2], sizes = [1, 8, 1], strides = [1, 1, 1]} : vector<4x8x8xf32> to vector<1x8x1xf32>
    %425 = vector.shape_cast %424 : vector<1x8x1xf32> to vector<8x1xf32>
    %426 = vector.shape_cast %425 : vector<8x1xf32> to vector<8x1xf32>
    %427 = vector.broadcast %426 : vector<8x1xf32> to vector<8x128xf32>
    %428 = vector.extract_strided_slice %401 {offsets = [2, 0], sizes = [1, 128], strides = [1, 1]} : vector<8x128xf32> to vector<1x128xf32>
    %429 = vector.shape_cast %428 : vector<1x128xf32> to vector<1x128xf32>
    %430 = vector.broadcast %429 : vector<1x128xf32> to vector<8x128xf32>
    %431 = arith.mulf %427, %430 : vector<8x128xf32>
    %432 = arith.addf %423, %431 : vector<8x128xf32>
    %433 = vector.extract_strided_slice %0 {offsets = [1, 0, 3], sizes = [1, 8, 1], strides = [1, 1, 1]} : vector<4x8x8xf32> to vector<1x8x1xf32>
    %434 = vector.shape_cast %433 : vector<1x8x1xf32> to vector<8x1xf32>
    %435 = vector.shape_cast %434 : vector<8x1xf32> to vector<8x1xf32>
    %436 = vector.broadcast %435 : vector<8x1xf32> to vector<8x128xf32>
    %437 = vector.extract_strided_slice %401 {offsets = [3, 0], sizes = [1, 128], strides = [1, 1]} : vector<8x128xf32> to vector<1x128xf32>
    %438 = vector.shape_cast %437 : vector<1x128xf32> to vector<1x128xf32>
    %439 = vector.broadcast %438 : vector<1x128xf32> to vector<8x128xf32>
    %440 = arith.mulf %436, %439 : vector<8x128xf32>
    %441 = arith.addf %432, %440 : vector<8x128xf32>
    %442 = vector.extract_strided_slice %0 {offsets = [1, 0, 4], sizes = [1, 8, 1], strides = [1, 1, 1]} : vector<4x8x8xf32> to vector<1x8x1xf32>
    %443 = vector.shape_cast %442 : vector<1x8x1xf32> to vector<8x1xf32>
    %444 = vector.shape_cast %443 : vector<8x1xf32> to vector<8x1xf32>
    %445 = vector.broadcast %444 : vector<8x1xf32> to vector<8x128xf32>
    %446 = vector.extract_strided_slice %401 {offsets = [4, 0], sizes = [1, 128], strides = [1, 1]} : vector<8x128xf32> to vector<1x128xf32>
    %447 = vector.shape_cast %446 : vector<1x128xf32> to vector<1x128xf32>
    %448 = vector.broadcast %447 : vector<1x128xf32> to vector<8x128xf32>
    %449 = arith.mulf %445, %448 : vector<8x128xf32>
    %450 = arith.addf %441, %449 : vector<8x128xf32>
    %451 = vector.extract_strided_slice %0 {offsets = [1, 0, 5], sizes = [1, 8, 1], strides = [1, 1, 1]} : vector<4x8x8xf32> to vector<1x8x1xf32>
    %452 = vector.shape_cast %451 : vector<1x8x1xf32> to vector<8x1xf32>
    %453 = vector.shape_cast %452 : vector<8x1xf32> to vector<8x1xf32>
    %454 = vector.broadcast %453 : vector<8x1xf32> to vector<8x128xf32>
    %455 = vector.extract_strided_slice %401 {offsets = [5, 0], sizes = [1, 128], strides = [1, 1]} : vector<8x128xf32> to vector<1x128xf32>
    %456 = vector.shape_cast %455 : vector<1x128xf32> to vector<1x128xf32>
    %457 = vector.broadcast %456 : vector<1x128xf32> to vector<8x128xf32>
    %458 = arith.mulf %454, %457 : vector<8x128xf32>
    %459 = arith.addf %450, %458 : vector<8x128xf32>
    %460 = vector.extract_strided_slice %0 {offsets = [1, 0, 6], sizes = [1, 8, 1], strides = [1, 1, 1]} : vector<4x8x8xf32> to vector<1x8x1xf32>
    %461 = vector.shape_cast %460 : vector<1x8x1xf32> to vector<8x1xf32>
    %462 = vector.shape_cast %461 : vector<8x1xf32> to vector<8x1xf32>
    %463 = vector.broadcast %462 : vector<8x1xf32> to vector<8x128xf32>
    %464 = vector.extract_strided_slice %401 {offsets = [6, 0], sizes = [1, 128], strides = [1, 1]} : vector<8x128xf32> to vector<1x128xf32>
    %465 = vector.shape_cast %464 : vector<1x128xf32> to vector<1x128xf32>
    %466 = vector.broadcast %465 : vector<1x128xf32> to vector<8x128xf32>
    %467 = arith.mulf %463, %466 : vector<8x128xf32>
    %468 = arith.addf %459, %467 : vector<8x128xf32>
    %469 = vector.extract_strided_slice %0 {offsets = [1, 0, 7], sizes = [1, 8, 1], strides = [1, 1, 1]} : vector<4x8x8xf32> to vector<1x8x1xf32>
    %470 = vector.shape_cast %469 : vector<1x8x1xf32> to vector<8x1xf32>
    %471 = vector.shape_cast %470 : vector<8x1xf32> to vector<8x1xf32>
    %472 = vector.broadcast %471 : vector<8x1xf32> to vector<8x128xf32>
    %473 = vector.extract_strided_slice %401 {offsets = [7, 0], sizes = [1, 128], strides = [1, 1]} : vector<8x128xf32> to vector<1x128xf32>
    %474 = vector.shape_cast %473 : vector<1x128xf32> to vector<1x128xf32>
    %475 = vector.broadcast %474 : vector<1x128xf32> to vector<8x128xf32>
    %476 = arith.mulf %472, %475 : vector<8x128xf32>
    %477 = arith.addf %468, %476 : vector<8x128xf32>
    %cst_17 = arith.constant 0.000000e+00 : f32
    %478 = vector.broadcast %cst_17 : f32 to vector<8x128xf32>
    %479 = arith.maximumf %477, %478 : vector<8x128xf32>
    %480 = vector.extract_strided_slice %1 {offsets = [2, 0, 0], sizes = [1, 8, 1], strides = [1, 1, 1]} : vector<4x8x1xf32> to vector<1x8x1xf32>
    %481 = vector.shape_cast %480 : vector<1x8x1xf32> to vector<8x1xf32>
    %482 = vector.shape_cast %481 : vector<8x1xf32> to vector<8x1xf32>
    %483 = vector.broadcast %482 : vector<8x1xf32> to vector<8x128xf32>
    %484 = vector.extract_strided_slice %0 {offsets = [2, 0, 0], sizes = [1, 8, 1], strides = [1, 1, 1]} : vector<4x8x8xf32> to vector<1x8x1xf32>
    %485 = vector.shape_cast %484 : vector<1x8x1xf32> to vector<8x1xf32>
    %486 = vector.shape_cast %485 : vector<8x1xf32> to vector<8x1xf32>
    %487 = vector.broadcast %486 : vector<8x1xf32> to vector<8x128xf32>
    %488 = vector.extract_strided_slice %479 {offsets = [0, 0], sizes = [1, 128], strides = [1, 1]} : vector<8x128xf32> to vector<1x128xf32>
    %489 = vector.shape_cast %488 : vector<1x128xf32> to vector<1x128xf32>
    %490 = vector.broadcast %489 : vector<1x128xf32> to vector<8x128xf32>
    %491 = arith.mulf %487, %490 : vector<8x128xf32>
    %492 = arith.addf %483, %491 : vector<8x128xf32>
    %493 = vector.extract_strided_slice %0 {offsets = [2, 0, 1], sizes = [1, 8, 1], strides = [1, 1, 1]} : vector<4x8x8xf32> to vector<1x8x1xf32>
    %494 = vector.shape_cast %493 : vector<1x8x1xf32> to vector<8x1xf32>
    %495 = vector.shape_cast %494 : vector<8x1xf32> to vector<8x1xf32>
    %496 = vector.broadcast %495 : vector<8x1xf32> to vector<8x128xf32>
    %497 = vector.extract_strided_slice %479 {offsets = [1, 0], sizes = [1, 128], strides = [1, 1]} : vector<8x128xf32> to vector<1x128xf32>
    %498 = vector.shape_cast %497 : vector<1x128xf32> to vector<1x128xf32>
    %499 = vector.broadcast %498 : vector<1x128xf32> to vector<8x128xf32>
    %500 = arith.mulf %496, %499 : vector<8x128xf32>
    %501 = arith.addf %492, %500 : vector<8x128xf32>
    %502 = vector.extract_strided_slice %0 {offsets = [2, 0, 2], sizes = [1, 8, 1], strides = [1, 1, 1]} : vector<4x8x8xf32> to vector<1x8x1xf32>
    %503 = vector.shape_cast %502 : vector<1x8x1xf32> to vector<8x1xf32>
    %504 = vector.shape_cast %503 : vector<8x1xf32> to vector<8x1xf32>
    %505 = vector.broadcast %504 : vector<8x1xf32> to vector<8x128xf32>
    %506 = vector.extract_strided_slice %479 {offsets = [2, 0], sizes = [1, 128], strides = [1, 1]} : vector<8x128xf32> to vector<1x128xf32>
    %507 = vector.shape_cast %506 : vector<1x128xf32> to vector<1x128xf32>
    %508 = vector.broadcast %507 : vector<1x128xf32> to vector<8x128xf32>
    %509 = arith.mulf %505, %508 : vector<8x128xf32>
    %510 = arith.addf %501, %509 : vector<8x128xf32>
    %511 = vector.extract_strided_slice %0 {offsets = [2, 0, 3], sizes = [1, 8, 1], strides = [1, 1, 1]} : vector<4x8x8xf32> to vector<1x8x1xf32>
    %512 = vector.shape_cast %511 : vector<1x8x1xf32> to vector<8x1xf32>
    %513 = vector.shape_cast %512 : vector<8x1xf32> to vector<8x1xf32>
    %514 = vector.broadcast %513 : vector<8x1xf32> to vector<8x128xf32>
    %515 = vector.extract_strided_slice %479 {offsets = [3, 0], sizes = [1, 128], strides = [1, 1]} : vector<8x128xf32> to vector<1x128xf32>
    %516 = vector.shape_cast %515 : vector<1x128xf32> to vector<1x128xf32>
    %517 = vector.broadcast %516 : vector<1x128xf32> to vector<8x128xf32>
    %518 = arith.mulf %514, %517 : vector<8x128xf32>
    %519 = arith.addf %510, %518 : vector<8x128xf32>
    %520 = vector.extract_strided_slice %0 {offsets = [2, 0, 4], sizes = [1, 8, 1], strides = [1, 1, 1]} : vector<4x8x8xf32> to vector<1x8x1xf32>
    %521 = vector.shape_cast %520 : vector<1x8x1xf32> to vector<8x1xf32>
    %522 = vector.shape_cast %521 : vector<8x1xf32> to vector<8x1xf32>
    %523 = vector.broadcast %522 : vector<8x1xf32> to vector<8x128xf32>
    %524 = vector.extract_strided_slice %479 {offsets = [4, 0], sizes = [1, 128], strides = [1, 1]} : vector<8x128xf32> to vector<1x128xf32>
    %525 = vector.shape_cast %524 : vector<1x128xf32> to vector<1x128xf32>
    %526 = vector.broadcast %525 : vector<1x128xf32> to vector<8x128xf32>
    %527 = arith.mulf %523, %526 : vector<8x128xf32>
    %528 = arith.addf %519, %527 : vector<8x128xf32>
    %529 = vector.extract_strided_slice %0 {offsets = [2, 0, 5], sizes = [1, 8, 1], strides = [1, 1, 1]} : vector<4x8x8xf32> to vector<1x8x1xf32>
    %530 = vector.shape_cast %529 : vector<1x8x1xf32> to vector<8x1xf32>
    %531 = vector.shape_cast %530 : vector<8x1xf32> to vector<8x1xf32>
    %532 = vector.broadcast %531 : vector<8x1xf32> to vector<8x128xf32>
    %533 = vector.extract_strided_slice %479 {offsets = [5, 0], sizes = [1, 128], strides = [1, 1]} : vector<8x128xf32> to vector<1x128xf32>
    %534 = vector.shape_cast %533 : vector<1x128xf32> to vector<1x128xf32>
    %535 = vector.broadcast %534 : vector<1x128xf32> to vector<8x128xf32>
    %536 = arith.mulf %532, %535 : vector<8x128xf32>
    %537 = arith.addf %528, %536 : vector<8x128xf32>
    %538 = vector.extract_strided_slice %0 {offsets = [2, 0, 6], sizes = [1, 8, 1], strides = [1, 1, 1]} : vector<4x8x8xf32> to vector<1x8x1xf32>
    %539 = vector.shape_cast %538 : vector<1x8x1xf32> to vector<8x1xf32>
    %540 = vector.shape_cast %539 : vector<8x1xf32> to vector<8x1xf32>
    %541 = vector.broadcast %540 : vector<8x1xf32> to vector<8x128xf32>
    %542 = vector.extract_strided_slice %479 {offsets = [6, 0], sizes = [1, 128], strides = [1, 1]} : vector<8x128xf32> to vector<1x128xf32>
    %543 = vector.shape_cast %542 : vector<1x128xf32> to vector<1x128xf32>
    %544 = vector.broadcast %543 : vector<1x128xf32> to vector<8x128xf32>
    %545 = arith.mulf %541, %544 : vector<8x128xf32>
    %546 = arith.addf %537, %545 : vector<8x128xf32>
    %547 = vector.extract_strided_slice %0 {offsets = [2, 0, 7], sizes = [1, 8, 1], strides = [1, 1, 1]} : vector<4x8x8xf32> to vector<1x8x1xf32>
    %548 = vector.shape_cast %547 : vector<1x8x1xf32> to vector<8x1xf32>
    %549 = vector.shape_cast %548 : vector<8x1xf32> to vector<8x1xf32>
    %550 = vector.broadcast %549 : vector<8x1xf32> to vector<8x128xf32>
    %551 = vector.extract_strided_slice %479 {offsets = [7, 0], sizes = [1, 128], strides = [1, 1]} : vector<8x128xf32> to vector<1x128xf32>
    %552 = vector.shape_cast %551 : vector<1x128xf32> to vector<1x128xf32>
    %553 = vector.broadcast %552 : vector<1x128xf32> to vector<8x128xf32>
    %554 = arith.mulf %550, %553 : vector<8x128xf32>
    %555 = arith.addf %546, %554 : vector<8x128xf32>
    %cst_18 = arith.constant 0.000000e+00 : f32
    %556 = vector.broadcast %cst_18 : f32 to vector<8x128xf32>
    %557 = arith.maximumf %555, %556 : vector<8x128xf32>
    %558 = arith.addf %557, %323 : vector<8x128xf32>
    %559 = vector.extract_strided_slice %1 {offsets = [3, 0, 0], sizes = [1, 8, 1], strides = [1, 1, 1]} : vector<4x8x1xf32> to vector<1x8x1xf32>
    %560 = vector.shape_cast %559 : vector<1x8x1xf32> to vector<8x1xf32>
    %561 = vector.shape_cast %560 : vector<8x1xf32> to vector<8x1xf32>
    %562 = vector.broadcast %561 : vector<8x1xf32> to vector<8x128xf32>
    %563 = vector.extract_strided_slice %0 {offsets = [3, 0, 0], sizes = [1, 8, 1], strides = [1, 1, 1]} : vector<4x8x8xf32> to vector<1x8x1xf32>
    %564 = vector.shape_cast %563 : vector<1x8x1xf32> to vector<8x1xf32>
    %565 = vector.shape_cast %564 : vector<8x1xf32> to vector<8x1xf32>
    %566 = vector.broadcast %565 : vector<8x1xf32> to vector<8x128xf32>
    %567 = vector.extract_strided_slice %558 {offsets = [0, 0], sizes = [1, 128], strides = [1, 1]} : vector<8x128xf32> to vector<1x128xf32>
    %568 = vector.shape_cast %567 : vector<1x128xf32> to vector<1x128xf32>
    %569 = vector.broadcast %568 : vector<1x128xf32> to vector<8x128xf32>
    %570 = arith.mulf %566, %569 : vector<8x128xf32>
    %571 = arith.addf %562, %570 : vector<8x128xf32>
    %572 = vector.extract_strided_slice %0 {offsets = [3, 0, 1], sizes = [1, 8, 1], strides = [1, 1, 1]} : vector<4x8x8xf32> to vector<1x8x1xf32>
    %573 = vector.shape_cast %572 : vector<1x8x1xf32> to vector<8x1xf32>
    %574 = vector.shape_cast %573 : vector<8x1xf32> to vector<8x1xf32>
    %575 = vector.broadcast %574 : vector<8x1xf32> to vector<8x128xf32>
    %576 = vector.extract_strided_slice %558 {offsets = [1, 0], sizes = [1, 128], strides = [1, 1]} : vector<8x128xf32> to vector<1x128xf32>
    %577 = vector.shape_cast %576 : vector<1x128xf32> to vector<1x128xf32>
    %578 = vector.broadcast %577 : vector<1x128xf32> to vector<8x128xf32>
    %579 = arith.mulf %575, %578 : vector<8x128xf32>
    %580 = arith.addf %571, %579 : vector<8x128xf32>
    %581 = vector.extract_strided_slice %0 {offsets = [3, 0, 2], sizes = [1, 8, 1], strides = [1, 1, 1]} : vector<4x8x8xf32> to vector<1x8x1xf32>
    %582 = vector.shape_cast %581 : vector<1x8x1xf32> to vector<8x1xf32>
    %583 = vector.shape_cast %582 : vector<8x1xf32> to vector<8x1xf32>
    %584 = vector.broadcast %583 : vector<8x1xf32> to vector<8x128xf32>
    %585 = vector.extract_strided_slice %558 {offsets = [2, 0], sizes = [1, 128], strides = [1, 1]} : vector<8x128xf32> to vector<1x128xf32>
    %586 = vector.shape_cast %585 : vector<1x128xf32> to vector<1x128xf32>
    %587 = vector.broadcast %586 : vector<1x128xf32> to vector<8x128xf32>
    %588 = arith.mulf %584, %587 : vector<8x128xf32>
    %589 = arith.addf %580, %588 : vector<8x128xf32>
    %590 = vector.extract_strided_slice %0 {offsets = [3, 0, 3], sizes = [1, 8, 1], strides = [1, 1, 1]} : vector<4x8x8xf32> to vector<1x8x1xf32>
    %591 = vector.shape_cast %590 : vector<1x8x1xf32> to vector<8x1xf32>
    %592 = vector.shape_cast %591 : vector<8x1xf32> to vector<8x1xf32>
    %593 = vector.broadcast %592 : vector<8x1xf32> to vector<8x128xf32>
    %594 = vector.extract_strided_slice %558 {offsets = [3, 0], sizes = [1, 128], strides = [1, 1]} : vector<8x128xf32> to vector<1x128xf32>
    %595 = vector.shape_cast %594 : vector<1x128xf32> to vector<1x128xf32>
    %596 = vector.broadcast %595 : vector<1x128xf32> to vector<8x128xf32>
    %597 = arith.mulf %593, %596 : vector<8x128xf32>
    %598 = arith.addf %589, %597 : vector<8x128xf32>
    %599 = vector.extract_strided_slice %0 {offsets = [3, 0, 4], sizes = [1, 8, 1], strides = [1, 1, 1]} : vector<4x8x8xf32> to vector<1x8x1xf32>
    %600 = vector.shape_cast %599 : vector<1x8x1xf32> to vector<8x1xf32>
    %601 = vector.shape_cast %600 : vector<8x1xf32> to vector<8x1xf32>
    %602 = vector.broadcast %601 : vector<8x1xf32> to vector<8x128xf32>
    %603 = vector.extract_strided_slice %558 {offsets = [4, 0], sizes = [1, 128], strides = [1, 1]} : vector<8x128xf32> to vector<1x128xf32>
    %604 = vector.shape_cast %603 : vector<1x128xf32> to vector<1x128xf32>
    %605 = vector.broadcast %604 : vector<1x128xf32> to vector<8x128xf32>
    %606 = arith.mulf %602, %605 : vector<8x128xf32>
    %607 = arith.addf %598, %606 : vector<8x128xf32>
    %608 = vector.extract_strided_slice %0 {offsets = [3, 0, 5], sizes = [1, 8, 1], strides = [1, 1, 1]} : vector<4x8x8xf32> to vector<1x8x1xf32>
    %609 = vector.shape_cast %608 : vector<1x8x1xf32> to vector<8x1xf32>
    %610 = vector.shape_cast %609 : vector<8x1xf32> to vector<8x1xf32>
    %611 = vector.broadcast %610 : vector<8x1xf32> to vector<8x128xf32>
    %612 = vector.extract_strided_slice %558 {offsets = [5, 0], sizes = [1, 128], strides = [1, 1]} : vector<8x128xf32> to vector<1x128xf32>
    %613 = vector.shape_cast %612 : vector<1x128xf32> to vector<1x128xf32>
    %614 = vector.broadcast %613 : vector<1x128xf32> to vector<8x128xf32>
    %615 = arith.mulf %611, %614 : vector<8x128xf32>
    %616 = arith.addf %607, %615 : vector<8x128xf32>
    %617 = vector.extract_strided_slice %0 {offsets = [3, 0, 6], sizes = [1, 8, 1], strides = [1, 1, 1]} : vector<4x8x8xf32> to vector<1x8x1xf32>
    %618 = vector.shape_cast %617 : vector<1x8x1xf32> to vector<8x1xf32>
    %619 = vector.shape_cast %618 : vector<8x1xf32> to vector<8x1xf32>
    %620 = vector.broadcast %619 : vector<8x1xf32> to vector<8x128xf32>
    %621 = vector.extract_strided_slice %558 {offsets = [6, 0], sizes = [1, 128], strides = [1, 1]} : vector<8x128xf32> to vector<1x128xf32>
    %622 = vector.shape_cast %621 : vector<1x128xf32> to vector<1x128xf32>
    %623 = vector.broadcast %622 : vector<1x128xf32> to vector<8x128xf32>
    %624 = arith.mulf %620, %623 : vector<8x128xf32>
    %625 = arith.addf %616, %624 : vector<8x128xf32>
    %626 = vector.extract_strided_slice %0 {offsets = [3, 0, 7], sizes = [1, 8, 1], strides = [1, 1, 1]} : vector<4x8x8xf32> to vector<1x8x1xf32>
    %627 = vector.shape_cast %626 : vector<1x8x1xf32> to vector<8x1xf32>
    %628 = vector.shape_cast %627 : vector<8x1xf32> to vector<8x1xf32>
    %629 = vector.broadcast %628 : vector<8x1xf32> to vector<8x128xf32>
    %630 = vector.extract_strided_slice %558 {offsets = [7, 0], sizes = [1, 128], strides = [1, 1]} : vector<8x128xf32> to vector<1x128xf32>
    %631 = vector.shape_cast %630 : vector<1x128xf32> to vector<1x128xf32>
    %632 = vector.broadcast %631 : vector<1x128xf32> to vector<8x128xf32>
    %633 = arith.mulf %629, %632 : vector<8x128xf32>
    %634 = arith.addf %625, %633 : vector<8x128xf32>
    %cst_19 = arith.constant 0.000000e+00 : f32
    %635 = vector.broadcast %cst_19 : f32 to vector<8x128xf32>
    %636 = arith.maximumf %634, %635 : vector<8x128xf32>
    %c1_20 = arith.constant 1 : index
    %c0_21 = arith.constant 0 : index
    %c0_22 = arith.constant 0 : index
    %637 = vector.load %arg5[%c1_20, %c0_21, %c0_22] : memref<2x8x128xf32, #tpu.memory_space<vmem>>, vector<1x8x128xf32>
    %638 = vector.shape_cast %637 : vector<1x8x128xf32> to vector<8x128xf32>
    %639 = vector.shape_cast %636 : vector<8x128xf32> to vector<1x8x128xf32>
    tpu.vector_store %arg5[%c1_20, %c0_21, %c0_22], %639 {strides = array<i32>} : memref<2x8x128xf32, #tpu.memory_space<vmem>>, vector<1x8x128xf32>,
    return
  }
  func.func @transform_0(%arg0: i32, %arg1: i32) -> (i32, i32, i32) {
    %c0_i32 = arith.constant 0 : i32
    %c0_i32_0 = arith.constant 0 : i32
    return %arg0, %c0_i32, %arg1 : i32, i32, i32
  }
  func.func @transform_1(%arg0: i32, %arg1: i32) -> (i32, i32, i32) {
    %c0_i32 = arith.constant 0 : i32
    %c0_i32_0 = arith.constant 0 : i32
    %c0_i32_1 = arith.constant 0 : i32
    %c0_i32_2 = arith.constant 0 : i32
    return %c0_i32, %c0_i32_0, %c0_i32_1 : i32, i32, i32
  }
  func.func @transform_2(%arg0: i32, %arg1: i32) -> (i32, i32, i32) {
    %c0_i32 = arith.constant 0 : i32
    %c0_i32_0 = arith.constant 0 : i32
    %c0_i32_1 = arith.constant 0 : i32
    %c0_i32_2 = arith.constant 0 : i32
    return %c0_i32, %c0_i32_0, %c0_i32_1 : i32, i32, i32
  }
  func.func @transform_3(%arg0: i32, %arg1: i32) -> (i32, i32, i32) {
    %c0_i32 = arith.constant 0 : i32
    %c0_i32_0 = arith.constant 0 : i32
    return %arg0, %c0_i32, %arg1 : i32, i32, i32
  }
}

</mosaic_0001>

<bundles_post_ra>
// kernel: tpu_custom_call.1
= control target key start
LH: loop header
LB: loop body
LE: loop exit
PB: predicated region body
PF: predicated region fallthrough
CT: control target
= control target key end

     0   :  { %8 = vsyncpa [#allocation3], 0  ;;  %s915_s0 = inlined_call_operand.hbm [shape: f32[2,8,128], index: 0, kind: input, shape index: {}]   ;;  %s916_s1 = inlined_call_operand.vmem [shape: f32[4,8,8], index: 1, kind: input, shape index: {}]   ;;  %s917_s2 = inlined_call_operand.vmem [shape: f32[4,8,1], index: 2, kind: input, shape index: {}]   ;;  %s918_s3 = inlined_call_operand.hbm [shape: f32[2,8,128], index: 3, kind: output, shape index: {}]  }
   0x1   :  { %9 = vsyncpa [#allocation4], 0  ;;  %s704_s12 = smov [#allocation2]   ;;  %s656_s16 = scalar_lea.hbm %s915_s0, 256 }
   0x2   :  { %s15_s13 = sshll.u32 %s704_s12, 4  ;;  %p657_p0 = scmp.ne.s32.totalorder %s915_s0, %s656_s16  ;;  %s16_s13 = int_to_ptr.vmem [resolvable:$true] %s15_s13 }
   0x3   :  { %p660_p1 = scmp.lt.u32.totalorder %s656_s16, %s915_s0 }
   0x5   :  { %p662_p2 = pnand %p660_p1, %p657_p0 }
   0x7   :  { %665 = shalt.err (!%p662_p2)
}
   0x8   :  { %s666_s21 = scalar_lea.vmem %s16_s13, 256  ;;  %p671_p4 = scmp.lt.s32.totalorder %s16_s13, %s16_s13 }
   0x9   :  { %p667_p3 = scmp.ne.s32.totalorder %s16_s13, %s666_s21  ;;  %p672_p5 = scmp.lt.s32.totalorder %s666_s21, %s666_s21 }
   0xb   :  { %p673_p6 = por %p672_p5, %p671_p4 }
   0xd   :  { %p674_p7 = pnand %p673_p6, %p667_p3 }
   0xf   :  { %677 = shalt.err (!%p674_p7)
}
  0x10   :  { %s705_s22 = smov 128   ;;  %s706_s23 = smov 8  }
  0x11   :  { %21 = dma.hbm_to_vmem [thread:$0]  %s915_s0, 256, %s16_s13, [#allocation3], %s705_s22, %s705_s22, %s706_s23  }
  0x12   :  { %700 = dma.done.wait [#allocation3], 256  }
  0x13   :  { %701 = vsyncadd [#allocation3], 4294967040  ;;  %v707_v0 = vmov 1   ;;  %v708_v1 = vmov 0   ;;  %v29_v2 = vld [vmem:[%s916_s1] sm:$0xff]  ;;  %v709_v4 = vmov 2   ;;  %v49_v16 = vlaneseq }
  0x14   :  { %621 = vset.pattern.permute.xlu1 %v707_v0  ;;  %620 = vset.pattern.permute.xlu0 %v708_v1  ;;  %v33_v3 = vld [vmem:[%s917_s2] sm:$0xff]  ;;  %v710_v5 = vmov 3   ;;  %v711_v6 = vmov 4   ;;  %v712_v7 = vmov 6   ;;  %v713_v8 = vmov 5   ;;  %v34_v9 = vld [vmem:[%s917_s2 + $0x8] sm:$0xff] }
  0x15   :  { %56 = vperm.xlu1 %621, %v29_v2   ;;  %46 = vperm.xlu0 %620, %v29_v2   ;;  %v714_v10 = vmov 7   ;;  %v30_v11 = vld [vmem:[%s916_s1 + $0x8] sm:$0xff]  ;;  %v35_v12 = vld [vmem:[%s917_s2 + $0x10] sm:$0xff]  ;;  %v36_v14 = vld [vmem:[%s917_s2 + $0x18] sm:$0xff]  ;;  %v50_v17 = vshrl.u32 %v49_v16, 7 }
  0x16   :  { %v31_v13 = vld [vmem:[%s916_s1 + $0x10] sm:$0xff]  ;;  %v32_v15 = vld [vmem:[%s916_s1 + $0x18] sm:$0xff]  ;;  %v37_v18 = vld [vmem:[#allocation2] sm:$0xff]  ;;  %s715_s1 = smov [#allocation5]  }
  0x17   :  { %v390_v19 = vld [vmem:[#allocation2 + $0x8] sm:$0xff]  ;;  %v798_v20 = vsub.s32 0, %v50_v17  ;;  %v800_v21 = vadd.f32 %v37_v18, %v37_v18  ;;  %v804_v23 = vsub.s32 1, %v50_v17  ;;  %v810_v26 = vsub.s32 2, %v50_v17  ;;  %s596_s2 = sshll.u32 %s715_s1, 4  ;;  %s597_s2 = int_to_ptr.vmem [resolvable:$true] %s596_s2 }
  0x18   :  { %v802_v22 = vadd.f32 %v390_v19, %v390_v19  ;;  %v812_v29 = vsub.s32 3, %v50_v17  ;;  %v822_v36 = vsub.s32 4, %v50_v17  ;;  %v832_v51 = vsub.s32 5, %v50_v17  ;;  %s678_s14 = scalar_lea.vmem %s597_s2, 256  ;;  %p683_p9 = scmp.lt.s32.totalorder %s597_s2, %s597_s2 }
  0x19   :  { %622 = vset.pattern.permute.xlu1 %v709_v4  ;;  %41 = vperm.xlu0 %620, %v33_v3   ;;  %v52_v24 = vrot.slane %v800_v21, %v798_v20  ;;  %v62_v30 = vrot.slane %v800_v21, %v804_v23  ;;  %v72_v34 = vrot.slane %v800_v21, %v810_v26  ;;  %v834_v52 = vsub.s32 6, %v50_v17  ;;  %p679_p8 = scmp.ne.s32.totalorder %s597_s2, %s678_s14  ;;  %p684_p10 = scmp.lt.s32.totalorder %s678_s14, %s678_s14 }
  0x1a   :  { %66 = vperm.xlu1 %622, %v29_v2   ;;  %v395_v25 = vrot.slane %v802_v22, %v798_v20  ;;  %v401_v31 = vrot.slane %v802_v22, %v804_v23  ;;  %v407_v35 = vrot.slane %v802_v22, %v810_v26  ;;  %v82_v38 = vrot.slane %v800_v21, %v812_v29 }
  0x1b   :  { %v413_v46 = vrot.slane %v802_v22, %v812_v29  ;;  %v92_v47 = vrot.slane %v800_v21, %v822_v36  ;;  %v419_v50 = vrot.slane %v802_v22, %v822_v36  ;;  %v102_v61 = vrot.slane %v800_v21, %v832_v51  ;;  %p685_p11 = por %p684_p10, %p683_p9 }
  0x1c   :  { %v425_v62 = vrot.slane %v802_v22, %v832_v51  ;;  %v844_v3 = vsub.s32 7, %v50_v17 }
  0x1d   :  { %623 = vset.pattern.permute.xlu0 %v710_v5  ;;  %p686_p12 = pnand %p685_p11, %p679_p8 }
  0x1e   :  { %624 = vset.pattern.permute.xlu1 %v711_v6  ;;  %76 = vperm.xlu0 %623, %v29_v2  }
  0x1f   :  { %86 = vperm.xlu1 %624, %v29_v2  }
  0x22   :  { %626 = vset.pattern.permute.xlu0 %v712_v7 }
  0x23   :  { %625 = vset.pattern.permute.xlu1 %v713_v8  ;;  %106 = vperm.xlu0 %626, %v29_v2  }
  0x24   :  { %96 = vperm.xlu1 %625, %v29_v2  }
  0x27   :  { %629 = vset.pattern.permute.xlu0 %v708_v1 }
  0x28   :  { %627 = vset.pattern.permute.xlu1 %v714_v10  ;;  %128 = vperm.xlu0 %629, %v34_v9  }
  0x29   :  { %116 = vperm.xlu1 %627, %v29_v2   ;;  %v431_v2 = vrot.slane %v802_v22, %v834_v52 }
  0x2c   :  { %632 = vset.pattern.permute.xlu0 %v710_v5 }
  0x2d   :  { %628 = vset.pattern.permute.xlu1 %v708_v1  ;;  %163 = vperm.xlu0 %632, %v30_v11  }
  0x2e   :  { %133 = vperm.xlu1 %628, %v30_v11  }
  0x31   :  { %635 = vset.pattern.permute.xlu0 %v712_v7 }
  0x32   :  { %630 = vset.pattern.permute.xlu1 %v707_v0  ;;  %193 = vperm.xlu0 %635, %v30_v11  }
  0x33   :  { %143 = vperm.xlu1 %630, %v30_v11  }
  0x36   :  { %638 = vset.pattern.permute.xlu0 %v708_v1 }
  0x37   :  { %631 = vset.pattern.permute.xlu1 %v709_v4  ;;  %215 = vperm.xlu0 %638, %v35_v12   ;;  %v122_v12 = vrot.slane %v800_v21, %v844_v3 }
  0x38   :  { %153 = vperm.xlu1 %631, %v30_v11  }
  0x3b   :  { %641 = vset.pattern.permute.xlu0 %v710_v5 }
  0x3c   :  { %633 = vset.pattern.permute.xlu1 %v711_v6  ;;  %250 = vperm.xlu0 %641, %v31_v13  }
  0x3d   :  { %173 = vperm.xlu1 %633, %v30_v11  }
  0x40   :  { %644 = vset.pattern.permute.xlu0 %v712_v7 }
  0x41   :  { %634 = vset.pattern.permute.xlu1 %v713_v8  ;;  %280 = vperm.xlu0 %644, %v31_v13  }
  0x42   :  { %183 = vperm.xlu1 %634, %v30_v11  }
  0x45   :  { %647 = vset.pattern.permute.xlu0 %v708_v1 }
  0x46   :  { %636 = vset.pattern.permute.xlu1 %v714_v10  ;;  %303 = vperm.xlu0 %647, %v36_v14  }
  0x47   :  { %203 = vperm.xlu1 %636, %v30_v11  }
  0x4a   :  { %650 = vset.pattern.permute.xlu0 %v710_v5 }
  0x4b   :  { %637 = vset.pattern.permute.xlu1 %v708_v1  ;;  %338 = vperm.xlu0 %650, %v32_v15  }
  0x4c   :  { %220 = vperm.xlu1 %637, %v31_v13  }
  0x4f   :  { %653 = vset.pattern.permute.xlu0 %v712_v7 }
  0x50   :  { %639 = vset.pattern.permute.xlu1 %v707_v0  ;;  %368 = vperm.xlu0 %653, %v32_v15  }
  0x51   :  { %230 = vperm.xlu1 %639, %v31_v13  }
  0x54   :  { %655 = vset.pattern.permute.xlu0 %v714_v10 }
  0x55   :  { %640 = vset.pattern.permute.xlu1 %v709_v4 }
  0x56   :  { %240 = vperm.xlu1 %640, %v31_v13  }
  0x5a   :  { %642 = vset.pattern.permute.xlu1 %v711_v6 }
  0x5b   :  { %260 = vperm.xlu1 %642, %v31_v13  }
  0x5f   :  { %643 = vset.pattern.permute.xlu1 %v713_v8 }
  0x60   :  { %270 = vperm.xlu1 %643, %v31_v13  }
  0x64   :  { %645 = vset.pattern.permute.xlu1 %v714_v10 }
  0x65   :  { %290 = vperm.xlu1 %645, %v31_v13   ;;  %v437_v13 = vrot.slane %v802_v22, %v844_v3 }
  0x69   :  { %646 = vset.pattern.permute.xlu1 %v708_v1  ;;  %v112_v1 = vrot.slane %v800_v21, %v834_v52 }
  0x6a   :  { %308 = vperm.xlu1 %646, %v32_v15  }
  0x6e   :  { %648 = vset.pattern.permute.xlu1 %v707_v0 }
  0x6f   :  { %318 = vperm.xlu1 %648, %v32_v15  }
  0x73   :  { %649 = vset.pattern.permute.xlu1 %v709_v4 }
  0x74   :  { %328 = vperm.xlu1 %649, %v32_v15  }
  0x78   :  { %651 = vset.pattern.permute.xlu1 %v711_v6 }
  0x79   :  { %348 = vperm.xlu1 %651, %v32_v15  }
  0x7d   :  { %652 = vset.pattern.permute.xlu1 %v713_v8 }
  0x7e   :  { %358 = vperm.xlu1 %652, %v32_v15  }
  0x82   :  { %654 = vset.pattern.permute.xlu1 %v714_v10 }
  0x83   :  { %378 = vperm.xlu1 %654, %v32_v15  }
  0x94   :  { %v57_v27 = vpop.permute.xlu1 %56  ;;  %v47_v28 = vpop.permute.xlu0 %46 }
  0x95   :  { %v53_v32 = vmul.f32 %v52_v24, %v47_v28  ;;  %v396_v33 = vmul.f32 %v395_v25, %v47_v28  ;;  %v63_v39 = vmul.f32 %v62_v30, %v57_v27  ;;  %v402_v40 = vmul.f32 %v401_v31, %v57_v27 }
  0x98   :  { %v42_v37 = vpop.permute.xlu0 %41 }
  0x99   :  { %v54_v41 = vadd.f32 %v53_v32, %v42_v37  ;;  %v397_v42 = vadd.f32 %v396_v33, %v42_v37  ;;  %v67_v43 = vpop.permute.xlu1 %66 }
  0x9a   :  { %v73_v44 = vmul.f32 %v72_v34, %v67_v43  ;;  %v408_v45 = vmul.f32 %v407_v35, %v67_v43 }
  0x9b   :  { %v64_v48 = vadd.f32 %v63_v39, %v54_v41  ;;  %v403_v49 = vadd.f32 %v402_v40, %v397_v42 }
  0x9d   :  { %v74_v53 = vadd.f32 %v73_v44, %v64_v48  ;;  %v409_v54 = vadd.f32 %v408_v45, %v403_v49  ;;  %v77_v55 = vpop.permute.xlu0 %76 }
  0x9e   :  { %v83_v56 = vmul.f32 %v82_v38, %v77_v55  ;;  %v414_v57 = vmul.f32 %v413_v46, %v77_v55  ;;  %v87_v58 = vpop.permute.xlu1 %86 }
  0x9f   :  { %v93_v59 = vmul.f32 %v92_v47, %v87_v58  ;;  %v420_v60 = vmul.f32 %v419_v50, %v87_v58 }
  0xa0   :  { %v84_v63 = vadd.f32 %v83_v56, %v74_v53  ;;  %v415_v0 = vadd.f32 %v414_v57, %v409_v54 }
  0xa2   :  { %v107_v4 = vpop.permute.xlu0 %106  ;;  %v94_v5 = vadd.f32 %v93_v59, %v84_v63  ;;  %v421_v6 = vadd.f32 %v420_v60, %v415_v0 }
  0xa3   :  { %v97_v7 = vpop.permute.xlu1 %96  ;;  %v113_v10 = vmul.f32 %v112_v1, %v107_v4  ;;  %v432_v11 = vmul.f32 %v431_v2, %v107_v4 }
  0xa4   :  { %v103_v8 = vmul.f32 %v102_v61, %v97_v7  ;;  %v426_v9 = vmul.f32 %v425_v62, %v97_v7 }
  0xa6   :  { %v104_v14 = vadd.f32 %v103_v8, %v94_v5  ;;  %v427_v15 = vadd.f32 %v426_v9, %v421_v6 }
  0xa7   :  { %v129_v40 = vpop.permute.xlu0 %128 }
  0xa8   :  { %v114_v16 = vadd.f32 %v113_v10, %v104_v14  ;;  %v433_v18 = vadd.f32 %v432_v11, %v427_v15  ;;  %v117_v17 = vpop.permute.xlu1 %116 }
  0xa9   :  { %v123_v19 = vmul.f32 %v122_v12, %v117_v17  ;;  %v438_v24 = vmul.f32 %v437_v13, %v117_v17 }
  0xab   :  { %v124_v25 = vadd.f32 %v123_v19, %v114_v16  ;;  %v439_v27 = vadd.f32 %v438_v24, %v433_v18 }
  0xac   :  { %v164_v58 = vpop.permute.xlu0 %163 }
  0xad   :  { %v125_v28 = vmax.f32 %v124_v25, 0.0  ;;  %v440_v30 = vmax.f32 %v439_v27, 0.0  ;;  %v134_v31 = vpop.permute.xlu1 %133 }
  0xaf   :  { %v139_v32 = vrot.slane %v125_v28, %v798_v20  ;;  %v444_v33 = vrot.slane %v440_v30, %v798_v20  ;;  %v149_v38 = vrot.slane %v125_v28, %v804_v23  ;;  %v450_v39 = vrot.slane %v440_v30, %v804_v23 }
  0xb0   :  { %v159_v45 = vrot.slane %v125_v28, %v810_v26  ;;  %v456_v46 = vrot.slane %v440_v30, %v810_v26  ;;  %v169_v47 = vrot.slane %v125_v28, %v812_v29  ;;  %v462_v48 = vrot.slane %v440_v30, %v812_v29 }
  0xb1   :  { %v140_v34 = vmul.f32 %v139_v32, %v134_v31  ;;  %v445_v35 = vmul.f32 %v444_v33, %v134_v31  ;;  %v179_v62 = vrot.slane %v125_v28, %v822_v36  ;;  %v468_v63 = vrot.slane %v440_v30, %v822_v36  ;;  %v194_v9 = vpop.permute.xlu0 %193 }
  0xb2   :  { %v144_v37 = vpop.permute.xlu1 %143  ;;  %v170_v59 = vmul.f32 %v169_v47, %v164_v58  ;;  %v463_v60 = vmul.f32 %v462_v48, %v164_v58  ;;  %v199_v5 = vrot.slane %v125_v28, %v834_v52  ;;  %v480_v6 = vrot.slane %v440_v30, %v834_v52 }
  0xb3   :  { %v141_v41 = vadd.f32 %v140_v34, %v129_v40  ;;  %v446_v42 = vadd.f32 %v445_v35, %v129_v40  ;;  %v150_v43 = vmul.f32 %v149_v38, %v144_v37  ;;  %v451_v44 = vmul.f32 %v450_v39, %v144_v37 }
  0xb4   :  { %v189_v7 = vrot.slane %v125_v28, %v832_v51  ;;  %v474_v8 = vrot.slane %v440_v30, %v832_v51  ;;  %v200_v15 = vmul.f32 %v199_v5, %v194_v9  ;;  %v481_v16 = vmul.f32 %v480_v6, %v194_v9 }
  0xb5   :  { %v151_v50 = vadd.f32 %v150_v43, %v141_v41  ;;  %v452_v53 = vadd.f32 %v451_v44, %v446_v42  ;;  %v209_v19 = vrot.slane %v125_v28, %v844_v3  ;;  %v486_v24 = vrot.slane %v440_v30, %v844_v3 }
  0xb7   :  { %v154_v49 = vpop.permute.xlu1 %153 }
  0xb8   :  { %v160_v54 = vmul.f32 %v159_v45, %v154_v49  ;;  %v457_v55 = vmul.f32 %v456_v46, %v154_v49  ;;  %v216_v45 = vpop.permute.xlu0 %215 }
  0xba   :  { %v161_v56 = vadd.f32 %v160_v54, %v151_v50  ;;  %v458_v57 = vadd.f32 %v457_v55, %v452_v53 }
  0xbc   :  { %v174_v61 = vpop.permute.xlu1 %173  ;;  %v171_v0 = vadd.f32 %v170_v59, %v161_v56  ;;  %v464_v2 = vadd.f32 %v463_v60, %v458_v57 }
  0xbd   :  { %v180_v1 = vmul.f32 %v179_v62, %v174_v61  ;;  %v469_v4 = vmul.f32 %v468_v63, %v174_v61  ;;  %v251_v63 = vpop.permute.xlu0 %250 }
  0xbf   :  { %v181_v11 = vadd.f32 %v180_v1, %v171_v0  ;;  %v470_v12 = vadd.f32 %v469_v4, %v464_v2 }
  0xc1   :  { %v184_v10 = vpop.permute.xlu1 %183 }
  0xc2   :  { %v190_v13 = vmul.f32 %v189_v7, %v184_v10  ;;  %v475_v14 = vmul.f32 %v474_v8, %v184_v10 }
  0xc4   :  { %v191_v18 = vadd.f32 %v190_v13, %v181_v11  ;;  %v476_v17 = vadd.f32 %v475_v14, %v470_v12  ;;  %v281_v14 = vpop.permute.xlu0 %280 }
  0xc6   :  { %v204_v25 = vpop.permute.xlu1 %203  ;;  %v201_v27 = vadd.f32 %v200_v15, %v191_v18  ;;  %v482_v31 = vadd.f32 %v481_v16, %v476_v17 }
  0xc7   :  { %v210_v32 = vmul.f32 %v209_v19, %v204_v25  ;;  %v487_v33 = vmul.f32 %v486_v24, %v204_v25 }
  0xc9   :  { %v211_v34 = vadd.f32 %v210_v32, %v201_v27  ;;  %v488_v35 = vadd.f32 %v487_v33, %v482_v31 }
  0xcb   :  { %v212_v37 = vmax.f32 %v211_v34, 0.0  ;;  %v489_v38 = vmax.f32 %v488_v35, 0.0  ;;  %v221_v39 = vpop.permute.xlu1 %220 }
  0xcd   :  { %v226_v40 = vrot.slane %v212_v37, %v798_v20  ;;  %v493_v41 = vrot.slane %v489_v38, %v798_v20  ;;  %v236_v28 = vrot.slane %v212_v37, %v804_v23  ;;  %v499_v30 = vrot.slane %v489_v38, %v804_v23 }
  0xce   :  { %v246_v50 = vrot.slane %v212_v37, %v810_v26  ;;  %v505_v53 = vrot.slane %v489_v38, %v810_v26  ;;  %v256_v54 = vrot.slane %v212_v37, %v812_v29  ;;  %v511_v55 = vrot.slane %v489_v38, %v812_v29 }
  0xcf   :  { %v227_v42 = vmul.f32 %v226_v40, %v221_v39  ;;  %v494_v43 = vmul.f32 %v493_v41, %v221_v39  ;;  %v266_v4 = vrot.slane %v212_v37, %v822_v36  ;;  %v517_v5 = vrot.slane %v489_v38, %v822_v36 }
  0xd0   :  { %v231_v44 = vpop.permute.xlu1 %230  ;;  %v257_v0 = vmul.f32 %v256_v54, %v251_v63  ;;  %v512_v1 = vmul.f32 %v511_v55, %v251_v63  ;;  %v286_v10 = vrot.slane %v212_v37, %v834_v52  ;;  %v529_v11 = vrot.slane %v489_v38, %v834_v52  ;;  %v304_v54 = vpop.permute.xlu0 %303 }
  0xd1   :  { %v228_v46 = vadd.f32 %v227_v42, %v216_v45  ;;  %v495_v47 = vadd.f32 %v494_v43, %v216_v45  ;;  %v237_v48 = vmul.f32 %v236_v28, %v231_v44  ;;  %v500_v49 = vmul.f32 %v499_v30, %v231_v44 }
  0xd2   :  { %v276_v12 = vrot.slane %v212_v37, %v832_v51  ;;  %v523_v13 = vrot.slane %v489_v38, %v832_v51  ;;  %v287_v24 = vmul.f32 %v286_v10, %v281_v14  ;;  %v530_v25 = vmul.f32 %v529_v11, %v281_v14 }
  0xd3   :  { %v238_v57 = vadd.f32 %v237_v48, %v228_v46  ;;  %v501_v58 = vadd.f32 %v500_v49, %v495_v47  ;;  %v296_v32 = vrot.slane %v212_v37, %v844_v3  ;;  %v535_v33 = vrot.slane %v489_v38, %v844_v3 }
  0xd5   :  { %v241_v56 = vpop.permute.xlu1 %240 }
  0xd6   :  { %v247_v59 = vmul.f32 %v246_v50, %v241_v56  ;;  %v506_v60 = vmul.f32 %v505_v53, %v241_v56 }
  0xd8   :  { %v248_v61 = vadd.f32 %v247_v59, %v238_v57  ;;  %v507_v62 = vadd.f32 %v506_v60, %v501_v58 }
  0xda   :  { %v261_v2 = vpop.permute.xlu1 %260  ;;  %v258_v6 = vadd.f32 %v257_v0, %v248_v61  ;;  %v513_v8 = vadd.f32 %v512_v1, %v507_v62 }
  0xdb   :  { %v267_v7 = vmul.f32 %v266_v4, %v261_v2  ;;  %v518_v9 = vmul.f32 %v517_v5, %v261_v2  ;;  %v339_v2 = vpop.permute.xlu0 %338 }
  0xdd   :  { %v268_v16 = vadd.f32 %v267_v7, %v258_v6  ;;  %v519_v18 = vadd.f32 %v518_v9, %v513_v8 }
  0xdf   :  { %v271_v15 = vpop.permute.xlu1 %270 }
  0xe0   :  { %v277_v17 = vmul.f32 %v276_v12, %v271_v15  ;;  %v524_v19 = vmul.f32 %v523_v13, %v271_v15  ;;  %v369_v15 = vpop.permute.xlu0 %368 }
  0xe2   :  { %v278_v27 = vadd.f32 %v277_v17, %v268_v16  ;;  %v525_v31 = vadd.f32 %v524_v19, %v519_v18 }
  0xe4   :  { %v291_v34 = vpop.permute.xlu1 %290  ;;  %v288_v35 = vadd.f32 %v287_v24, %v278_v27  ;;  %v531_v39 = vadd.f32 %v530_v25, %v525_v31 }
  0xe5   :  { %v297_v40 = vmul.f32 %v296_v32, %v291_v34  ;;  %v536_v41 = vmul.f32 %v535_v33, %v291_v34 }
  0xe7   :  { %v298_v42 = vadd.f32 %v297_v40, %v288_v35  ;;  %v537_v43 = vadd.f32 %v536_v41, %v531_v39 }
  0xe9   :  { %v299_v44 = vmax.f32 %v298_v42, 0.0  ;;  %v538_v28 = vmax.f32 %v537_v43, 0.0  ;;  %v309_v30 = vpop.permute.xlu1 %308 }
  0xeb   :  { %v300_v45 = vadd.f32 %v299_v44, %v800_v21  ;;  %v539_v46 = vadd.f32 %v538_v28, %v802_v22 }
  0xed   :  { %v314_v47 = vrot.slane %v300_v45, %v798_v20  ;;  %v543_v37 = vrot.slane %v539_v46, %v798_v20  ;;  %v324_v38 = vrot.slane %v300_v45, %v804_v23  ;;  %v549_v49 = vrot.slane %v539_v46, %v804_v23 }
  0xee   :  { %v319_v48 = vpop.permute.xlu1 %318  ;;  %v334_v21 = vrot.slane %v300_v45, %v810_v26  ;;  %v555_v22 = vrot.slane %v539_v46, %v810_v26  ;;  %v344_v20 = vrot.slane %v300_v45, %v812_v29  ;;  %v561_v62 = vrot.slane %v539_v46, %v812_v29 }
  0xef   :  { %v315_v50 = vmul.f32 %v314_v47, %v309_v30  ;;  %v544_v53 = vmul.f32 %v543_v37, %v309_v30  ;;  %v325_v57 = vmul.f32 %v324_v38, %v319_v48  ;;  %v550_v58 = vmul.f32 %v549_v49, %v319_v48 }
  0xf0   :  { %v345_v4 = vmul.f32 %v344_v20, %v339_v2  ;;  %v562_v5 = vmul.f32 %v561_v62, %v339_v2  ;;  %v354_v7 = vrot.slane %v300_v45, %v822_v36  ;;  %v567_v8 = vrot.slane %v539_v46, %v822_v36 }
  0xf1   :  { %v316_v55 = vadd.f32 %v315_v50, %v304_v54  ;;  %v545_v56 = vadd.f32 %v544_v53, %v304_v54  ;;  %v374_v12 = vrot.slane %v300_v45, %v834_v52  ;;  %v579_v29 = vrot.slane %v539_v46, %v834_v52 }
  0xf2   :  { %v364_v13 = vrot.slane %v300_v45, %v832_v51  ;;  %v573_v14 = vrot.slane %v539_v46, %v832_v51  ;;  %v384_v32 = vrot.slane %v300_v45, %v844_v3  ;;  %v585_v33 = vrot.slane %v539_v46, %v844_v3 }
  0xf3   :  { %v326_v59 = vadd.f32 %v325_v57, %v316_v55  ;;  %v551_v60 = vadd.f32 %v550_v58, %v545_v56  ;;  %v329_v61 = vpop.permute.xlu1 %328  ;;  %v375_v25 = vmul.f32 %v374_v12, %v369_v15  ;;  %v580_v36 = vmul.f32 %v579_v29, %v369_v15 }
  0xf4   :  { %v335_v63 = vmul.f32 %v334_v21, %v329_v61  ;;  %v556_v23 = vmul.f32 %v555_v22, %v329_v61 }
  0xf6   :  { %v336_v0 = vadd.f32 %v335_v63, %v326_v59  ;;  %v557_v1 = vadd.f32 %v556_v23, %v551_v60 }
  0xf8   :  { %v349_v6 = vpop.permute.xlu1 %348  ;;  %v346_v26 = vadd.f32 %v345_v4, %v336_v0  ;;  %v563_v10 = vadd.f32 %v562_v5, %v557_v1 }
  0xf9   :  { %v355_v9 = vmul.f32 %v354_v7, %v349_v6  ;;  %v568_v11 = vmul.f32 %v567_v8, %v349_v6 }
  0xfb   :  { %v356_v18 = vadd.f32 %v355_v9, %v346_v26  ;;  %v569_v17 = vadd.f32 %v568_v11, %v563_v10 }
  0xfd   :  { %v359_v16 = vpop.permute.xlu1 %358 }
  0xfe   :  { %v365_v19 = vmul.f32 %v364_v13, %v359_v16  ;;  %v574_v24 = vmul.f32 %v573_v14, %v359_v16 }
 0x100   :  { %v366_v27 = vadd.f32 %v365_v19, %v356_v18  ;;  %v575_v31 = vadd.f32 %v574_v24, %v569_v17 }
 0x102   :  { %v379_v34 = vpop.permute.xlu1 %378  ;;  %v376_v52 = vadd.f32 %v375_v25, %v366_v27  ;;  %v581_v35 = vadd.f32 %v580_v36, %v575_v31 }
 0x103   :  { %v385_v39 = vmul.f32 %v384_v32, %v379_v34  ;;  %v586_v40 = vmul.f32 %v585_v33, %v379_v34 }
 0x105   :  { %v386_v51 = vadd.f32 %v385_v39, %v376_v52  ;;  %v587_v41 = vadd.f32 %v586_v40, %v581_v35 }
 0x107   :  { %v387_v42 = vmax.f32 %v386_v51, 0.0  ;;  %v588_v43 = vmax.f32 %v587_v41, 0.0 }
 0x109   :  { %388 = vst [vmem:[#allocation5] sm:$0xff] %v387_v42  ;;  %590 = vst [vmem:[#allocation5 + $0x8] sm:$0xff] %v588_v43 }
 0x10a   :  { %689 = shalt.err (!%p686_p12)
}
 0x10b   :  { %s690_s17 = scalar_lea.hbm %s918_s3, 256 }
 0x10c   :  { %p691_p13 = scmp.ne.s32.totalorder %s918_s3, %s690_s17  ;;  %p694_p0 = scmp.lt.u32.totalorder %s690_s17, %s918_s3 }
 0x10e   :  { %p696_p1 = pnand %p694_p0, %p691_p13 }
 0x110   :  { %699 = shalt.err (!%p696_p1)
}
 0x111   :  { %602 = dma.vmem_to_hbm [thread:$0]  %s597_s2, 256, %s918_s3, [#allocation4], %s705_s22, %s705_s22, %s706_s23  }
 0x112   :  { %702 = dma.done.wait [#allocation4], 256  }
 0x113   :  { %703 = vsyncadd [#allocation4], 4294967040 }
 0x114   :  { %606 = vsyncpa [#allocation3], 1 }
 0x115   :  { %607 = vsyncpa [#allocation4], 1 }

</bundles_post_ra>
